<compile_context>
chip_gen: v7x
topology: tpu7x:2x2x1
jax: 0.10.0
libtpu: 0.0.40
codegen_flags: <defaults>
</compile_context>

<pallas_src>
import jax
import jax.numpy as jnp
from jax.experimental import pallas as pl
from jax.experimental.pallas import tpu as pltpu


def _round_up(x, m):
    return ((x + m - 1) // m) * m


def _cdiv(a, b):
    return -(-a // b)


def _leaky_relu(h, slope=0.01):
    # PyTorch nn.LeakyReLU default negative_slope = 0.01.
    return jnp.where(h > 0, h, slope * h)


def mlp_kernel(x_ref,
               w0_ref, b0_ref,
               w1_ref, b1_ref,
               w2_ref, b2_ref,
               wc_ref, bc_ref,
               out_ref):
    cdt = w0_ref.dtype   # MXU compute dtype (bf16 by default)

    # x arrives f32; cast to the MXU dtype here (VPU has slack -- the kernel
    # is MXU/DMA-bound) instead of a separate un-hidden XLA pass in the wrapper.
    x = x_ref[...].astype(cdt)

    h = jnp.dot(x, w0_ref[...], preferred_element_type=jnp.float32)
    h = _leaky_relu(h + b0_ref[...]).astype(cdt)

    h = jnp.dot(h, w1_ref[...], preferred_element_type=jnp.float32)
    h = _leaky_relu(h + b1_ref[...]).astype(cdt)

    h = jnp.dot(h, w2_ref[...], preferred_element_type=jnp.float32)
    h = _leaky_relu(h + b2_ref[...]).astype(cdt)

    # TODO(synk): nn.Dropout(p=0.5) is only active in training; inference
    # semantics are identity, which is what we implement here.

    out_ref[...] = (jnp.dot(h, wc_ref[...], preferred_element_type=jnp.float32)
                    + bc_ref[...]).astype(out_ref.dtype)


def prepare_params(params, *, compute_dtype=jnp.bfloat16):
    """One-time (init-time) weight preparation.

    Casts the weights to the MXU compute dtype and lane-pads the tiny
    classifier (hidden -> 2) to a 128-wide output block.  Hoisting this out of
    the per-call hot path removes an XLA fusion whose HBM traffic was
    comparable to the kernel's own.
    """
    n_cls = params["wc"].shape[1]
    n_pad = _round_up(max(n_cls, 128), 128)       # lane-dense output block
    return {
        "w0": params["w0"].astype(compute_dtype),
        "b0": params["b0"].astype(jnp.float32),
        "w1": params["w1"].astype(compute_dtype),
        "b1": params["b1"].astype(jnp.float32),
        "w2": params["w2"].astype(compute_dtype),
        "b2": params["b2"].astype(jnp.float32),
        "wc": jnp.pad(params["wc"], ((0, 0), (0, n_pad - n_cls))).astype(compute_dtype),
        "bc": jnp.pad(params["bc"], ((0, 0), (0, n_pad - n_cls))).astype(jnp.float32),
        "n_cls": n_cls,
    }


def _choose_tiling(B, tile_b):
    """Pick (tile_b, B_pad).

    * tile_b is a multiple of 16 (bf16 sublane packing for the activations).
    * >= 2 grid steps whenever the batch allows: both v7x TensorCores get
      work and the x-tile DMA of step i+1 overlaps compute of step i on
      v5e/v6e.
    * prefer an even step count (v7x 2-TC split) when the tile can stay
      >= 128 rows; otherwise keep the larger tile so the ~0.35 us/step fixed
      overhead does not dominate.
    """
    B16 = _round_up(B, 16)
    tile_b = _round_up(max(16, min(tile_b, B16)), 16)
    n_steps = _cdiv(B16, tile_b)
    if n_steps < 2 and B16 > 16:
        tile_b = _round_up(_cdiv(B16, 2), 16)
    elif n_steps > 1 and n_steps % 2 == 1:
        cand = _round_up(_cdiv(B16, n_steps + 1), 16)
        if cand >= 128:
            tile_b = cand
    B_pad = _round_up(B16, tile_b)
    return tile_b, B_pad


def mlp_classifier_forward(x, prepared, *, tile_b=512):
    """x: (B, input_dim) float32.  prepared: output of prepare_params().

    Returns (B, n_cls) bfloat16 logits.
    """
    B, D_in = x.shape
    H = prepared["w0"].shape[1]
    n_pad = prepared["wc"].shape[1]
    n_cls = prepared["n_cls"]
    compute_dtype = prepared["w0"].dtype

    tile_b, B_pad = _choose_tiling(B, tile_b)

    # NOTE: if the production batch is tiny (B ~ 8) a plain fused XLA dot
    # chain will match or beat this kernel -- it is weight-DMA bound there.

    # x stays f32 here (single pad op only); the bf16 cast happens in-kernel.
    x_p = x if B_pad == B else jnp.pad(x, ((0, B_pad - B), (0, 0)))

    grid = (B_pad // tile_b,)

    in_specs = [
        pl.BlockSpec((tile_b, D_in), lambda i: (i, 0)),   # x tile (f32)
        # Constant index_maps: weights/biases are DMA'd once and stay
        # VMEM-resident across grid steps (total ~0.6 MB in bf16).
        pl.BlockSpec((D_in, H),      lambda i: (0, 0)),   # w0
        pl.BlockSpec((1, H),         lambda i: (0, 0)),   # b0
        pl.BlockSpec((H, H),         lambda i: (0, 0)),   # w1
        pl.BlockSpec((1, H),         lambda i: (0, 0)),   # b1
        pl.BlockSpec((H, H),         lambda i: (0, 0)),   # w2
        pl.BlockSpec((1, H),         lambda i: (0, 0)),   # b2
        pl.BlockSpec((H, n_pad),     lambda i: (0, 0)),   # wc (lane padded)
        pl.BlockSpec((1, n_pad),     lambda i: (0, 0)),   # bc (lane padded)
    ]
    out_spec = pl.BlockSpec((tile_b, n_pad), lambda i: (i, 0))

    w_item = jnp.dtype(compute_dtype).itemsize
    weight_bytes = (prepared["w0"].size + prepared["w1"].size
                    + prepared["w2"].size + prepared["wc"].size) * w_item
    bias_bytes = (prepared["b0"].size + prepared["b1"].size
                  + prepared["b2"].size + prepared["bc"].size) * 4
    flops = 2 * B_pad * (D_in * H + 2 * H * H + H * n_pad)
    bytes_accessed = (x_p.size * 4 + weight_bytes + bias_bytes
                      + B_pad * n_pad * w_item)
    cost = pl.CostEstimate(flops=int(flops), transcendentals=0,
                           bytes_accessed=int(bytes_accessed))

    out = pl.pallas_call(
        mlp_kernel,
        # bf16 logits: halves write-back of the 128-lane-padded output block;
        # only the n_cls real columns survive the final slice anyway.
        out_shape=jax.ShapeDtypeStruct((B_pad, n_pad), compute_dtype),
        grid_spec=pltpu.PrefetchScalarGridSpec(
            num_scalar_prefetch=0,
            grid=grid,
            in_specs=in_specs,
            out_specs=out_spec,
        ),
        compiler_params=pltpu.CompilerParams(
            dimension_semantics=("parallel",),
            # ~2-3 MB total footprint (double-buffered) -- far below the 32 MB
            # scoped limit and v7x's 64 MiB physical VMEM.
            vmem_limit_bytes=32 * 1024 * 1024,
        ),
        cost_estimate=cost,
    )(x_p,
      prepared["w0"], prepared["b0"],
      prepared["w1"], prepared["b1"],
      prepared["w2"], prepared["b2"],
      prepared["wc"], prepared["bc"])

    return out[:B, :n_cls]


def init_params(key, input_dim, hidden_dim, n_cls=2, scale=0.1):
    ks = jax.random.split(key, 8)

    def w(k, shape):
        return (scale * jax.random.normal(k, shape)).astype(jnp.float32)

    return {
        "w0": w(ks[0], (input_dim, hidden_dim)),
        "b0": w(ks[1], (1, hidden_dim)),
        "w1": w(ks[2], (hidden_dim, hidden_dim)),
        "b1": w(ks[3], (1, hidden_dim)),
        "w2": w(ks[4], (hidden_dim, hidden_dim)),
        "b2": w(ks[5], (1, hidden_dim)),
        "wc": w(ks[6], (hidden_dim, n_cls)),
        "bc": w(ks[7], (1, n_cls)),
    }


def reference_forward(x, p, compute_dtype=jnp.bfloat16):
    """Pure-JAX reference mirroring the bf16-input / f32-accumulate recipe."""
    def layer(h, w, b):
        return jnp.dot(h.astype(compute_dtype), w.astype(compute_dtype),
                       preferred_element_type=jnp.float32) + b

    h = _leaky_relu(layer(x, p["w0"], p["b0"]))
    h = _leaky_relu(layer(h, p["w1"], p["b1"]))
    h = _leaky_relu(layer(h, p["w2"], p["b2"]))
    return layer(h, p["wc"], p["bc"])


if __name__ == "__main__":
    key = jax.random.PRNGKey(0)
    k_x, k_p = jax.random.split(key)

    # Module-default feature dims (input_dim=512, hidden_dim=256, 2 classes).
    # A ragged batch of 200 exercises the round-up padding path and yields a
    # 2-step grid (both v7x TensorCores busy, DMA/compute overlap on v5e/v6e).
    B, INPUT_DIM, HIDDEN_DIM = 200, 512, 256
    x = jax.random.normal(k_x, (B, INPUT_DIM), dtype=jnp.float32)
    params = init_params(k_p, INPUT_DIM, HIDDEN_DIM, scale=0.1)

    # One-time weight preparation (cast + classifier lane-pad), hoisted out of
    # the per-call hot path per the performance review.
    prepared = prepare_params(params)

    out = mlp_classifier_forward(x, prepared)
    out = jax.block_until_ready(out)
    assert out.shape == (B, 2), out.shape
    assert out.dtype == jnp.bfloat16, out.dtype

    ref = reference_forward(x, params)
    out_f32 = out.astype(jnp.float32)
    max_err = float(jnp.max(jnp.abs(out_f32 - ref)))
    assert jnp.allclose(out_f32, ref, atol=3e-2, rtol=3e-2), \
        f"mismatch vs ref, max_err={max_err}"

    print("KERNEL_OK")
</pallas_src>

<mosaic_0001>
module attributes {stable_mosaic.version = 11 : i64} {
  func.func @mlp_kernel(%arg0: i32, %arg1: memref<112x512xf32, #tpu.memory_space<vmem>>, %arg2: memref<512x256xbf16, #tpu.memory_space<vmem>>, %arg3: memref<1x256xf32, #tpu.memory_space<vmem>>, %arg4: memref<256x256xbf16, #tpu.memory_space<vmem>>, %arg5: memref<1x256xf32, #tpu.memory_space<vmem>>, %arg6: memref<256x256xbf16, #tpu.memory_space<vmem>>, %arg7: memref<1x256xf32, #tpu.memory_space<vmem>>, %arg8: memref<256x128xbf16, #tpu.memory_space<vmem>>, %arg9: memref<1x128xf32, #tpu.memory_space<vmem>>, %arg10: memref<112x128xbf16, #tpu.memory_space<vmem>>) attributes {dimension_semantics = [#tpu.dimension_semantics<parallel>], iteration_bounds = array<i64: 2>, scalar_prefetch = 0 : i64, scratch_operands = 0 : i64, tpu.core_type = #tpu.core_type<tc>, window_params = [{transform_indices = @transform_0, window_bounds = array<i64: 112, 512>}, {pipeline_mode = #tpu.pipeline_mode<synchronous>, transform_indices = @transform_1, window_bounds = array<i64: 512, 256>}, {pipeline_mode = #tpu.pipeline_mode<synchronous>, transform_indices = @transform_2, window_bounds = array<i64: 1, 256>}, {pipeline_mode = #tpu.pipeline_mode<synchronous>, transform_indices = @transform_3, window_bounds = array<i64: 256, 256>}, {pipeline_mode = #tpu.pipeline_mode<synchronous>, transform_indices = @transform_4, window_bounds = array<i64: 1, 256>}, {pipeline_mode = #tpu.pipeline_mode<synchronous>, transform_indices = @transform_5, window_bounds = array<i64: 256, 256>}, {pipeline_mode = #tpu.pipeline_mode<synchronous>, transform_indices = @transform_6, window_bounds = array<i64: 1, 256>}, {pipeline_mode = #tpu.pipeline_mode<synchronous>, transform_indices = @transform_7, window_bounds = array<i64: 256, 128>}, {pipeline_mode = #tpu.pipeline_mode<synchronous>, transform_indices = @transform_8, window_bounds = array<i64: 1, 128>}, {transform_indices = @transform_9, window_bounds = array<i64: 112, 128>}]} {
    %c0 = arith.constant 0 : index
    %c0_0 = arith.constant 0 : index
    %0 = vector.load %arg1[%c0, %c0_0] : memref<112x512xf32, #tpu.memory_space<vmem>>, vector<112x512xf32>
    %1 = arith.truncf %0 : vector<112x512xf32> to vector<112x512xbf16>
    %c0_1 = arith.constant 0 : index
    %c0_2 = arith.constant 0 : index
    %2 = vector.load %arg2[%c0_1, %c0_2] : memref<512x256xbf16, #tpu.memory_space<vmem>>, vector<512x256xbf16>
    %cst = arith.constant dense<0.000000e+00> : vector<112x256xf32>
    %3 = tpu.matmul %1, %2, %cst {dimension_numbers = #tpu.dot_dimension_numbers<[1], [0], [0], [1], [0, 0, 1, 1], [], []>} : vector<112x512xbf16>, vector<512x256xbf16>, vector<112x256xf32> -> vector<112x256xf32>
    %c0_3 = arith.constant 0 : index
    %c0_4 = arith.constant 0 : index
    %4 = vector.load %arg3[%c0_3, %c0_4] : memref<1x256xf32, #tpu.memory_space<vmem>>, vector<1x256xf32>
    %5 = vector.broadcast %4 : vector<1x256xf32> to vector<112x256xf32>
    %6 = arith.addf %3, %5 : vector<112x256xf32>
    %cst_5 = arith.constant 0.000000e+00 : f32
    %7 = vector.broadcast %cst_5 : f32 to vector<112x256xf32>
    %8 = arith.cmpf ogt, %6, %7 : vector<112x256xf32>
    %cst_6 = arith.constant 0.00999999977 : f32
    %9 = vector.broadcast %cst_6 : f32 to vector<112x256xf32>
    %10 = arith.mulf %9, %6 : vector<112x256xf32>
    %11 = arith.select %8, %6, %10 : vector<112x256xi1>, vector<112x256xf32>
    %12 = arith.truncf %11 : vector<112x256xf32> to vector<112x256xbf16>
    %c0_7 = arith.constant 0 : index
    %c0_8 = arith.constant 0 : index
    %13 = vector.load %arg4[%c0_7, %c0_8] : memref<256x256xbf16, #tpu.memory_space<vmem>>, vector<256x256xbf16>
    %cst_9 = arith.constant dense<0.000000e+00> : vector<112x256xf32>
    %14 = tpu.matmul %12, %13, %cst_9 {dimension_numbers = #tpu.dot_dimension_numbers<[1], [0], [0], [1], [0, 0, 1, 1], [], []>} : vector<112x256xbf16>, vector<256x256xbf16>, vector<112x256xf32> -> vector<112x256xf32>
    %c0_10 = arith.constant 0 : index
    %c0_11 = arith.constant 0 : index
    %15 = vector.load %arg5[%c0_10, %c0_11] : memref<1x256xf32, #tpu.memory_space<vmem>>, vector<1x256xf32>
    %16 = vector.broadcast %15 : vector<1x256xf32> to vector<112x256xf32>
    %17 = arith.addf %14, %16 : vector<112x256xf32>
    %cst_12 = arith.constant 0.000000e+00 : f32
    %18 = vector.broadcast %cst_12 : f32 to vector<112x256xf32>
    %19 = arith.cmpf ogt, %17, %18 : vector<112x256xf32>
    %cst_13 = arith.constant 0.00999999977 : f32
    %20 = vector.broadcast %cst_13 : f32 to vector<112x256xf32>
    %21 = arith.mulf %20, %17 : vector<112x256xf32>
    %22 = arith.select %19, %17, %21 : vector<112x256xi1>, vector<112x256xf32>
    %23 = arith.truncf %22 : vector<112x256xf32> to vector<112x256xbf16>
    %c0_14 = arith.constant 0 : index
    %c0_15 = arith.constant 0 : index
    %24 = vector.load %arg6[%c0_14, %c0_15] : memref<256x256xbf16, #tpu.memory_space<vmem>>, vector<256x256xbf16>
    %cst_16 = arith.constant dense<0.000000e+00> : vector<112x256xf32>
    %25 = tpu.matmul %23, %24, %cst_16 {dimension_numbers = #tpu.dot_dimension_numbers<[1], [0], [0], [1], [0, 0, 1, 1], [], []>} : vector<112x256xbf16>, vector<256x256xbf16>, vector<112x256xf32> -> vector<112x256xf32>
    %c0_17 = arith.constant 0 : index
    %c0_18 = arith.constant 0 : index
    %26 = vector.load %arg7[%c0_17, %c0_18] : memref<1x256xf32, #tpu.memory_space<vmem>>, vector<1x256xf32>
    %27 = vector.broadcast %26 : vector<1x256xf32> to vector<112x256xf32>
    %28 = arith.addf %25, %27 : vector<112x256xf32>
    %cst_19 = arith.constant 0.000000e+00 : f32
    %29 = vector.broadcast %cst_19 : f32 to vector<112x256xf32>
    %30 = arith.cmpf ogt, %28, %29 : vector<112x256xf32>
    %cst_20 = arith.constant 0.00999999977 : f32
    %31 = vector.broadcast %cst_20 : f32 to vector<112x256xf32>
    %32 = arith.mulf %31, %28 : vector<112x256xf32>
    %33 = arith.select %30, %28, %32 : vector<112x256xi1>, vector<112x256xf32>
    %34 = arith.truncf %33 : vector<112x256xf32> to vector<112x256xbf16>
    %c0_21 = arith.constant 0 : index
    %c0_22 = arith.constant 0 : index
    %35 = vector.load %arg8[%c0_21, %c0_22] : memref<256x128xbf16, #tpu.memory_space<vmem>>, vector<256x128xbf16>
    %cst_23 = arith.constant dense<0.000000e+00> : vector<112x128xf32>
    %36 = tpu.matmul %34, %35, %cst_23 {dimension_numbers = #tpu.dot_dimension_numbers<[1], [0], [0], [1], [0, 0, 1, 1], [], []>} : vector<112x256xbf16>, vector<256x128xbf16>, vector<112x128xf32> -> vector<112x128xf32>
    %c0_24 = arith.constant 0 : index
    %c0_25 = arith.constant 0 : index
    %37 = vector.load %arg9[%c0_24, %c0_25] : memref<1x128xf32, #tpu.memory_space<vmem>>, vector<1x128xf32>
    %38 = vector.broadcast %37 : vector<1x128xf32> to vector<112x128xf32>
    %39 = arith.addf %36, %38 : vector<112x128xf32>
    %40 = arith.truncf %39 : vector<112x128xf32> to vector<112x128xbf16>
    %c0_26 = arith.constant 0 : index
    %c0_27 = arith.constant 0 : index
    %41 = vector.load %arg10[%c0_26, %c0_27] : memref<112x128xbf16, #tpu.memory_space<vmem>>, vector<112x128xbf16>
    tpu.vector_store %arg10[%c0_26, %c0_27], %40 {strides = array<i32>} : memref<112x128xbf16, #tpu.memory_space<vmem>>, vector<112x128xbf16>,
    return
  }
  func.func @transform_0(%arg0: i32) -> (i32, i32) {
    %c0_i32 = arith.constant 0 : i32
    %c0_i32_0 = arith.constant 0 : i32
    return %arg0, %c0_i32 : i32, i32
  }
  func.func @transform_1(%arg0: i32) -> (i32, i32) {
    %c0_i32 = arith.constant 0 : i32
    %c0_i32_0 = arith.constant 0 : i32
    %c0_i32_1 = arith.constant 0 : i32
    return %c0_i32, %c0_i32_0 : i32, i32
  }
  func.func @transform_2(%arg0: i32) -> (i32, i32) {
    %c0_i32 = arith.constant 0 : i32
    %c0_i32_0 = arith.constant 0 : i32
    %c0_i32_1 = arith.constant 0 : i32
    return %c0_i32, %c0_i32_0 : i32, i32
  }
  func.func @transform_3(%arg0: i32) -> (i32, i32) {
    %c0_i32 = arith.constant 0 : i32
    %c0_i32_0 = arith.constant 0 : i32
    %c0_i32_1 = arith.constant 0 : i32
    return %c0_i32, %c0_i32_0 : i32, i32
  }
  func.func @transform_4(%arg0: i32) -> (i32, i32) {
    %c0_i32 = arith.constant 0 : i32
    %c0_i32_0 = arith.constant 0 : i32
    %c0_i32_1 = arith.constant 0 : i32
    return %c0_i32, %c0_i32_0 : i32, i32
  }
  func.func @transform_5(%arg0: i32) -> (i32, i32) {
    %c0_i32 = arith.constant 0 : i32
    %c0_i32_0 = arith.constant 0 : i32
    %c0_i32_1 = arith.constant 0 : i32
    return %c0_i32, %c0_i32_0 : i32, i32
  }
  func.func @transform_6(%arg0: i32) -> (i32, i32) {
    %c0_i32 = arith.constant 0 : i32
    %c0_i32_0 = arith.constant 0 : i32
    %c0_i32_1 = arith.constant 0 : i32
    return %c0_i32, %c0_i32_0 : i32, i32
  }
  func.func @transform_7(%arg0: i32) -> (i32, i32) {
    %c0_i32 = arith.constant 0 : i32
    %c0_i32_0 = arith.constant 0 : i32
    %c0_i32_1 = arith.constant 0 : i32
    return %c0_i32, %c0_i32_0 : i32, i32
  }
  func.func @transform_8(%arg0: i32) -> (i32, i32) {
    %c0_i32 = arith.constant 0 : i32
    %c0_i32_0 = arith.constant 0 : i32
    %c0_i32_1 = arith.constant 0 : i32
    return %c0_i32, %c0_i32_0 : i32, i32
  }
  func.func @transform_9(%arg0: i32) -> (i32, i32) {
    %c0_i32 = arith.constant 0 : i32
    %c0_i32_0 = arith.constant 0 : i32
    return %arg0, %c0_i32 : i32, i32
  }
}

</mosaic_0001>

<bundles_post_ra>
// kernel: tpu_custom_call.1
= control target key start
LH: loop header
LB: loop body
LE: loop exit
PB: predicated region body
PF: predicated region fallthrough
CT: control target
= control target key end

     0   :  { %s3896_s0 = inlined_call_operand.hbm [shape: f32[224,512], index: 0, kind: input, shape index: {}]   ;;  %s3897_s1 = inlined_call_operand.hbm [shape: bf16[512,256], index: 1, kind: input, shape index: {}]   ;;  %s3898_s2 = inlined_call_operand.vmem [shape: f32[1,256], index: 2, kind: input, shape index: {}]   ;;  %s3899_s3 = inlined_call_operand.hbm [shape: bf16[256,256], index: 3, kind: input, shape index: {}]   ;;  %s3900_s4 = inlined_call_operand.vmem [shape: f32[1,256], index: 4, kind: input, shape index: {}]   ;;  %s3901_s5 = inlined_call_operand.hbm [shape: bf16[256,256], index: 5, kind: input, shape index: {}]   ;;  %s3902_s6 = inlined_call_operand.vmem [shape: f32[1,256], index: 6, kind: input, shape index: {}]   ;;  %s3903_s7 = inlined_call_operand.hbm [shape: bf16[256,128], index: 7, kind: input, shape index: {}]   ;;  %s3904_s8 = inlined_call_operand.vmem [shape: f32[1,128], index: 8, kind: input, shape index: {}]   ;;  %s3905_s9 = inlined_call_operand.hbm [shape: bf16[224,128], index: 9, kind: output, shape index: {}]  }
   0x1   :  { %3912 = sst [smem:[#allocation18_spill]] %s3905_s9 }
   0x2   :  { %14 = vsyncpa [#allocation3], 0 }
   0x3   :  { %16 = vsyncpa [#allocation3 + $0x1], 0 }
   0x4   :  { %17 = vsyncpa [#allocation6], 0 }
   0x5   :  { %18 = vsyncpa [#allocation9], 0 }
   0x6   :  { %19 = vsyncpa [#allocation4], 0 }
   0x7   :  { %21 = vsyncpa [#allocation4 + $0x1], 0  ;;  %s3379_s30 = smov 0   ;;  %s3381_s10 = smov 0  }
   0x8   :  { %s3383_s11 = smov 0   ;;  %s3385_s12 = smov 0  }
   0x9 LB: > { %3913 = sst [smem:[#allocation16_spill]] %s3301_s30  ;;  %s3400_s13 = sadd.s32 4294967295, %s3313_s12   ;;  %s3313_s12 = sphi %s3385_s12, %s3937_s12   ;;  %s3309_s11 = sphi %s3383_s11, %s3936_s11   ;;  %s3305_s10 = sphi %s3381_s10, %s3935_s10   ;;  %s3301_s30 = sphi %s3379_s30, %s3934_s30  }
   0xa   : > { %s2426_s14 = sadd.s32 4294967294, %s3313_s12   ;;  %p47_p0 = scmp.ne.s32.totalorder %s3305_s10, %s3301_s30 }
   0xb   : > { %p3906_p1 = scmp.eq.s32.totalorder %s3400_s13, 0  ;;  %p245_p3 = scmp.eq.s32.totalorder %s2426_s14, 1 }
   0xc   : > { %p2427_p5 = scmp.ge.s32.totalorder %s3313_s12, 1  ;;  %p252_p7 = scmp.lt.s32.totalorder %s3313_s12, 3 }
   0xd   : > { %p3409_p4 = por %p3906_p1, %p47_p0  ;;  %p3414_p6 = por %p245_p3, %p47_p0 }
   0xe   : > { %p3419_p8 = pnand %p2427_p5, %p252_p7  ;;  %s3315_s18 = smov [#allocation5]  }
   0xf   : > { %s3914_s15 = scalar_select %p3409_p4, 1, 0 }
  0x10   : > { %s3915_s16 = scalar_select %p3414_p6, 1, 0 }
  0x11   : > { %s3917_s17 = scalar_select %p3419_p8, 1, 0 }
  0x12   : > { %3916 = sst [smem:[#allocation17_spill]] %s3915_s16  ;;  %s264_s19 = sshll.u32 %s3315_s18, 4  ;;  %s3423_s19 = int_to_ptr.vmem [resolvable:$true] %s264_s19 }
  0x13   : > { %p2814_p9 = pneg %p3419_p8  ;;  %s3316_s21 = smov [#allocation8]  }
  0x14   : > { %s296_s22 = sshll.u32 %s3316_s21, 4  ;;  %s3317_s23 = smov [#allocation7]   ;;  %s3434_s22 = int_to_ptr.vmem [resolvable:$true] %s296_s22 }
  0x15   : > { %p3430_p11 = pnand %p2814_p9, %p3906_p1  ;;  %s3436_s24 = sshll.u32 %s3317_s23, 4  ;;  %s281_s24 = int_to_ptr.vmem [resolvable:$true] %s3436_s24 }
  0x16   : > { %s3097_s27 = scalar_lea.hbm %s3897_s1, 8192 }
  0x17   : > { %p3098_p12 = scmp.ne.s32.totalorder %s3897_s1, %s3097_s27  ;;  %p3446_p13 = pneg %p3430_p11 }
  0x18   : > { %p3104_p5 = scmp.lt.u32.totalorder %s3097_s27, %s3897_s1 }
  0x19   : > { %p3100_p0 = pnand %p3446_p13, %p3098_p12 }
  0x1b   : > { %p3101_p3 = pneg %p3100_p0 }
  0x1d   : > { %p3106_p7 = pnand %p3104_p5, %p3101_p3 }
  0x1f   : > { %3109 = shalt.err (!%p3106_p7)
}
  0x20   : > { %s3110_s23 = scalar_lea.vmem %s3423_s19, 8192  ;;  %p3118_p2 = scmp.lt.s32.totalorder %s3423_s19, %s3423_s19 }
  0x21   : > { %p3111_p9 = scmp.ne.s32.totalorder %s3423_s19, %s3110_s23  ;;  %p3119_p6 = scmp.lt.s32.totalorder %s3110_s23, %s3110_s23 }
  0x23   : > { %p3113_p10 = pnand %p3111_p9, %p3446_p13  ;;  %p3120_p12 = por %p3119_p6, %p3118_p2 }
  0x25   : > { %p3114_p1 = pneg %p3113_p10 }
  0x27   : > { %p3121_p0 = pnand %p3120_p12, %p3114_p1 }
  0x29   : > { %3124 = shalt.err (!%p3121_p0)
}
  0x2a   : > { %s3318_s25 = smov 128   ;;  %s3319_s26 = smov 8  }
  0x2b   : > { %2817 = dma.hbm_to_vmem [thread:$0]  (!%p3430_p11), %s3897_s1, 8192, %s3423_s19, [#allocation6], %s3318_s25, %s3318_s25, %s3319_s26  }
  0x2c   : > { %s3125_s21 = scalar_lea.hbm %s3901_s5, 4096 }
  0x2d   : > { %p3126_p1 = scmp.ne.s32.totalorder %s3901_s5, %s3125_s21  ;;  %p3132_p10 = scmp.lt.u32.totalorder %s3125_s21, %s3901_s5 }
  0x2f   : > { %p3128_p2 = pnand %p3126_p1, %p3446_p13 }
  0x31   : > { %p3129_p6 = pneg %p3128_p2 }
  0x33   : > { %p3134_p3 = pnand %p3132_p10, %p3129_p6 }
  0x35   : > { %3137 = shalt.err (!%p3134_p3)
}
  0x36   : > { %s3138_s19 = scalar_lea.vmem %s3434_s22, 4096  ;;  %p3146_p12 = scmp.lt.s32.totalorder %s3434_s22, %s3434_s22 }
  0x37   : > { %p3139_p5 = scmp.ne.s32.totalorder %s3434_s22, %s3138_s19  ;;  %p3147_p0 = scmp.lt.s32.totalorder %s3138_s19, %s3138_s19 }
  0x39   : > { %p3141_p7 = pnand %p3139_p5, %p3446_p13  ;;  %p3148_p1 = por %p3147_p0, %p3146_p12 }
  0x3b   : > { %p3142_p9 = pneg %p3141_p7 }
  0x3d   : > { %p3149_p2 = pnand %p3148_p1, %p3142_p9 }
  0x3f   : > { %3152 = shalt.err (!%p3149_p2)
}
  0x40   : > { %2823 = dma.hbm_to_vmem [thread:$0]  (!%p3430_p11), %s3901_s5, 4096, %s3434_s22, [#allocation9], %s3318_s25, %s3318_s25, %s3319_s26  }
  0x41   : > { %s3153_s28 = scalar_lea.hbm %s3899_s3, 4096 }
  0x42   : > { %p3154_p6 = scmp.ne.s32.totalorder %s3899_s3, %s3153_s28  ;;  %p3160_p5 = scmp.lt.u32.totalorder %s3153_s28, %s3899_s3 }
  0x44   : > { %p3156_p10 = pnand %p3154_p6, %p3446_p13 }
  0x46   : > { %p3157_p3 = pneg %p3156_p10 }
  0x48   : > { %p3162_p7 = pnand %p3160_p5, %p3157_p3 }
  0x4a   : > { %3165 = shalt.err (!%p3162_p7)
}
  0x4b   : > { %s3166_s19 = scalar_lea.vmem %s281_s24, 4096  ;;  %p3174_p1 = scmp.lt.s32.totalorder %s281_s24, %s281_s24 }
  0x4c   : > { %p3167_p9 = scmp.ne.s32.totalorder %s281_s24, %s3166_s19  ;;  %p3175_p2 = scmp.lt.s32.totalorder %s3166_s19, %s3166_s19 }
  0x4e   : > { %p3169_p12 = pnand %p3167_p9, %p3446_p13  ;;  %p3176_p4 = por %p3175_p2, %p3174_p1 }
  0x50   : > { %p3170_p0 = pneg %p3169_p12 }
  0x52   : > { %p3177_p8 = pnand %p3176_p4, %p3170_p0 }
  0x54   : > { %3180 = shalt.err (!%p3177_p8)
}
  0x55   : > { %2820 = dma.hbm_to_vmem [thread:$0]  (!%p3430_p11), %s3899_s3, 4096, %s281_s24, [#allocation6], %s3318_s25, %s3318_s25, %s3319_s26  }
  0x56   : > { %s3320_s30 = smov [#allocation10]   ;;  %s3181_s29 = scalar_lea.hbm %s3903_s7, 2048 }
  0x57   : > { %s312_s16 = sshll.u32 %s3320_s30, 4  ;;  %p3182_p4 = scmp.ne.s32.totalorder %s3903_s7, %s3181_s29  ;;  %s313_s16 = int_to_ptr.vmem [resolvable:$true] %s312_s16 }
  0x58   : > { %p3188_p10 = scmp.lt.u32.totalorder %s3181_s29, %s3903_s7 }
  0x59   : > { %p3184_p8 = pnand %p3182_p4, %p3446_p13 }
  0x5b   : > { %p3185_p6 = pneg %p3184_p8 }
  0x5d   : > { %p3190_p3 = pnand %p3188_p10, %p3185_p6 }
  0x5f   : > { %3193 = shalt.err (!%p3190_p3)
}
  0x60   : > { %s3194_s24 = scalar_lea.vmem %s313_s16, 2048  ;;  %p3202_p12 = scmp.lt.s32.totalorder %s313_s16, %s313_s16 }
  0x61   : > { %p3195_p5 = scmp.ne.s32.totalorder %s313_s16, %s3194_s24  ;;  %p3203_p0 = scmp.lt.s32.totalorder %s3194_s24, %s3194_s24 }
  0x63   : > { %p3197_p7 = pnand %p3195_p5, %p3446_p13  ;;  %p3204_p1 = por %p3203_p0, %p3202_p12 }
  0x65   : > { %p3198_p9 = pneg %p3197_p7 }
  0x67   : > { %p3205_p2 = pnand %p3204_p1, %p3198_p9 }
  0x69   : > { %3208 = shalt.err (!%p3205_p2)
}
  0x6a   : > { %s3321_s25 = smov 64   ;;  %s3322_s14 = smov 4  }
  0x6b   : > { %2826 = dma.hbm_to_vmem [thread:$0]  (!%p3430_p11), %s3903_s7, 2048, %s313_s16, [#allocation9], %s3321_s25, %s3321_s25, %s3322_s14  }
  0x6c   : > { %s3537_s9 = sadd.s32 1, %s3313_s12   ;;  %s34_s27 = sadd.s32 1, %s3309_s11 }
  0x6d   : > { %s31_s30 = ssub.s32 %s3313_s12, %s3537_s9  ;;  %p41_p4 = scmp.ne.s32.totalorder %s3309_s11, %s3305_s10 }
  0x6e   : > { %p32_p13 = scmp.eq.s32.totalorder %s31_s30, 0  ;;  %p42_p8 = scmp.eq.s32.totalorder %s3313_s12, 0 }
  0x6f   : > { %p3920_p10 = scmp.eq.s32.totalorder %s3400_s13, 1  ;;  %p2839_p5 = scmp.lt.s32.totalorder %s3313_s12, 2 }
  0x70   : > { %s3546_s28 = scalar_select %p32_p13, %s3309_s11, %s34_s27  }
  0x71   : > { %p43_p6 = por %p42_p8, %p41_p4  ;;  %p3550_p3 = por %p3920_p10, %p41_p4 }
  0x72   : > { %s329_s20 = sand.u32 1, %s3309_s11   ;;  %s2654_s16 = smul.u32 7168, %s3313_s12 }
  0x73   : > { %s2791_s18 = smul.u32 448, %s329_s20  ;;  %p3557_p11 = pnand %p2839_p5, %p43_p6 }
  0x74   : > { %s3564_s24 = scalar_lea.hbm %s3896_s0, %s2654_s16  ;;  %s3568_s26 = scalar_lea.sflag [#allocation3], %s329_s20 }
  0x75   : > { %s333_s25 = scalar_lea.vmem [#allocation2], %s2791_s18  ;;  %s3209_s22 = scalar_lea.hbm %s3564_s24, 7168 }
  0x76   : > { %s341_s14 = sshll.u32 %s333_s25, 4  ;;  %p3210_p7 = scmp.ne.s32.totalorder %s3564_s24, %s3209_s22  ;;  %s3566_s14 = int_to_ptr.vmem [resolvable:$true] %s341_s14 }
  0x77   : > { %p3211_p9 = pneg %p3557_p11  ;;  %s3214_s16 = scalar_lea.hbm %s3896_s0, 14336 }
  0x78   : > { %p3215_p1 = scmp.lt.u32.totalorder %s3564_s24, %s3896_s0  ;;  %p3216_p2 = scmp.lt.u32.totalorder %s3214_s16, %s3209_s22 }
  0x79   : > { %p3212_p12 = pnand %p3211_p9, %p3210_p7  ;;  %p3218_p4 = scmp.lt.u32.totalorder %s3209_s22, %s3564_s24 }
  0x7a   : > { %p3217_p13 = por %p3216_p2, %p3215_p1 }
  0x7b   : > { %p3213_p0 = pneg %p3212_p12 }
  0x7c   : > { %p3219_p8 = por %p3218_p4, %p3217_p13 }
  0x7e   : > { %p3220_p6 = pnand %p3219_p8, %p3213_p0 }
  0x80   : > { %3223 = shalt.err (!%p3220_p6)
}
  0x81   : > { %s3224_s20 = scalar_lea.vmem %s3566_s14, 7168  ;;  %s3323_s18 = smov [#allocation2]  }
  0x82   : > { %p3225_p10 = scmp.ne.s32.totalorder %s3566_s14, %s3224_s20  ;;  %s3229_s25 = sshll.u32 %s3323_s18, 4  ;;  %s3230_s25 = int_to_ptr.vmem [resolvable:$false] %s3229_s25 }
  0x83   : > { %s3231_s30 = scalar_lea.vmem %s3230_s25, 14336  ;;  %p3232_p12 = scmp.lt.s32.totalorder %s3566_s14, %s3230_s25 }
  0x84   : > { %p3227_p5 = pnand %p3225_p10, %p3211_p9  ;;  %p3233_p1 = scmp.lt.s32.totalorder %s3231_s30, %s3224_s20 }
  0x86   : > { %p3228_p7 = pneg %p3227_p5  ;;  %p3234_p2 = por %p3233_p1, %p3232_p12 }
  0x88   : > { %p3235_p13 = pnand %p3234_p2, %p3228_p7 }
  0x8a   : > { %3238 = shalt.err (!%p3235_p13)
}
  0x8b   : > { %s3324_s22 = smov 512   ;;  %s3325_s27 = smov 32  }
  0x8c   : > { %2830 = dma.hbm_to_vmem [thread:$0]  (!%p3557_p11), %s3564_s24, 7168, %s3566_s14, %s3568_s26, %s3324_s22, %s3324_s22, %s3325_s27  }
  0x8d   : > { %p3923_p9 = scmp.ne.s32.totalorder %s3917_s17, 0 }
  0x8e   : > { %s3599_s16 = sand.u32 (!%p3923_p9), 1, %s3305_s10   ;;  %p3924_p0 = scmp.ne.s32.totalorder (!%p3923_p9), %s3914_s15, 0 }
  0x8f   : > { %353 = sbr.rel (%p3923_p9) target bundleno = 1240 (0x4d8), region = 56  ;;  %s356_s19 = scalar_lea.sflag (!%p3923_p9), [#allocation3], %s3599_s16 }
  0x90   : > { %s2792_s23 = smul.u32 (!%p3923_p9), 448, %s3599_s16 }
  0x92   : > { %s3603_s20 = scalar_lea.vmem (!%p3923_p9), [#allocation2], %s2792_s23 }
  0x96   : > { %3284 = dma.done.wait (%p3924_p0), %s356_s19, 7168  }
  0x97   : > { %3286 = vsyncadd (%p3924_p0), %s356_s19, 4294960128  ;;  %p3925_p11 = scmp.eq.s32.totalorder %s3400_s13, 0 }
  0x99   : > { %3288 = dma.done.wait (%p3925_p11), [#allocation6], 12288   ;;  %p3926_p4 = pmov %p3925_p11 }
  0x9b   : > { %3290 = vsyncadd (%p3926_p4), [#allocation6], 4294955008  ;;  %p3927_p8 = pmov %p3926_p4 }
  0x9c   : > { %p3928_p6 = pmov %p3926_p4 }
  0x9d   : > { %3292 = dma.done.wait (%p3927_p8), [#allocation9], 6144  }
  0x9e   : > { %3294 = vsyncadd (%p3928_p6), [#allocation9], 4294961152  ;;  %v2889_v0 = vld [vmem:[#allocation5 + $0x4] ss:$8 sps:$4 sm:$0xff]   ;;  %v2891_v1 = vld [vmem:[#allocation5] ss:$8 sps:$4 sm:$0xff]  }
  0x9f   : > { %893 = vmatprep.subr.bf16.mxu0 %v2889_v0  ;;  %v2892_v2 = vld [vmem:[#allocation5 + $0x14] ss:$8 sps:$4 sm:$0xff]   ;;  %v2894_v3 = vld [vmem:[#allocation5 + $0x10] ss:$8 sps:$4 sm:$0xff]   ;;  %v2895_v4 = vld [vmem:[#allocation5 + $0x24] ss:$8 sps:$4 sm:$0xff]  }
  0xa0   : > { %894 = vmatpush1.bf16.msra.mxu0 %v2891_v1  ;;  %v2897_v5 = vld [vmem:[#allocation5 + $0x20] ss:$8 sps:$4 sm:$0xff]   ;;  %v2898_v6 = vld [vmem:[#allocation5 + $0x34] ss:$8 sps:$4 sm:$0xff]   ;;  %v2900_v7 = vld [vmem:[#allocation5 + $0x30] ss:$8 sps:$4 sm:$0xff]  }
  0xa1   : > { %895 = vmatprep.subr.bf16.mxu0 %v2892_v2  ;;  %v2901_v8 = vld [vmem:[#allocation5 + $0x44] ss:$8 sps:$4 sm:$0xff]   ;;  %v2903_v9 = vld [vmem:[#allocation5 + $0x40] ss:$8 sps:$4 sm:$0xff]   ;;  %v2904_v10 = vld [vmem:[#allocation5 + $0x54] ss:$8 sps:$4 sm:$0xff]  }
  0xa2   : > { %v2906_v11 = vld [vmem:[#allocation5 + $0x50] ss:$8 sps:$4 sm:$0xff]   ;;  %v2907_v12 = vld [vmem:[#allocation5 + $0x64] ss:$8 sps:$4 sm:$0xff]   ;;  %v2909_v16 = vld [vmem:[#allocation5 + $0x60] ss:$8 sps:$4 sm:$0xff]  }
  0xa3   : > { %v414_v13 = vld [vmem:[%s3603_s20 + $0x8] sm:$0xff]  ;;  %v2910_v17 = vld [vmem:[#allocation5 + $0x74] ss:$8 sps:$4 sm:$0xff]   ;;  %v2912_v18 = vld [vmem:[#allocation5 + $0x70] ss:$8 sps:$4 sm:$0xff]   ;;  %s2793_s30 = smul.u32 56, %s3599_s16 }
  0xa4   : > { %896 = vmatpush1.bf16.msra.mxu0 %v2894_v3  ;;  %v418_v14 = vld [vmem:[%s3603_s20 + $0x28] sm:$0xff]  ;;  %v2916_v21 = vld [vmem:[#allocation5 + $0x94] ss:$8 sps:$4 sm:$0xff]   ;;  %v2918_v22 = vld [vmem:[#allocation5 + $0x90] ss:$8 sps:$4 sm:$0xff]   ;;  %s2618_s23 = smul.u32 896, %s3400_s13 }
  0xa5   : > { %897 = vmatprep.subr.bf16.mxu0 %v2895_v4  ;;  %v470_v15 = vpack.c.bf16 %v418_v14, %v414_v13  ;;  %v2913_v19 = vld [vmem:[#allocation5 + $0x84] ss:$8 sps:$4 sm:$0xff]   ;;  %v2915_v20 = vld [vmem:[#allocation5 + $0x80] ss:$8 sps:$4 sm:$0xff]   ;;  %v2922_v25 = vld [vmem:[#allocation5 + $0xb4] ss:$8 sps:$4 sm:$0xff]  }
  0xa6   : > { %v2919_v23 = vld [vmem:[#allocation5 + $0xa4] ss:$8 sps:$4 sm:$0xff]   ;;  %v2921_v24 = vld [vmem:[#allocation5 + $0xa0] ss:$8 sps:$4 sm:$0xff]   ;;  %v2924_v26 = vld [vmem:[#allocation5 + $0xb0] ss:$8 sps:$4 sm:$0xff]  }
  0xa7   : > { %925 = vmatprep.mubr.bf16.mxu0 %v470_v15  ;;  %v2925_v27 = vld [vmem:[#allocation5 + $0xc4] ss:$8 sps:$4 sm:$0xff]   ;;  %v2927_v28 = vld [vmem:[#allocation5 + $0xc0] ss:$8 sps:$4 sm:$0xff]   ;;  %v2928_v29 = vld [vmem:[#allocation5 + $0xd4] ss:$8 sps:$4 sm:$0xff]  }
  0xa8   : > { %898 = vmatpush1.bf16.msra.mxu0 %v2897_v5  ;;  %v2930_v30 = vld [vmem:[#allocation5 + $0xd0] ss:$8 sps:$4 sm:$0xff]   ;;  %v2931_v31 = vld [vmem:[#allocation5 + $0xe4] ss:$8 sps:$4 sm:$0xff]   ;;  %v2933_v32 = vld [vmem:[#allocation5 + $0xe0] ss:$8 sps:$4 sm:$0xff]  }
  0xa9   : > { %899 = vmatprep.subr.bf16.mxu0 %v2898_v6  ;;  %v2934_v33 = vld [vmem:[#allocation5 + $0xf4] ss:$8 sps:$4 sm:$0xff]   ;;  %v2936_v34 = vld [vmem:[#allocation5 + $0xf0] ss:$8 sps:$4 sm:$0xff]   ;;  %v413_v35 = vld [vmem:[%s3603_s20] sm:$0xff]  ;;  %s3824_s22 = scalar_lea.vmem [#allocation11], %s2793_s30 }
  0xaa   : > { %v417_v36 = vld [vmem:[%s3603_s20 + $0x20] sm:$0xff]  ;;  %v422_v38 = vld [vmem:[%s3603_s20 + $0x48] sm:$0xff]  ;;  %v2988_v45 = vld [vmem:[#allocation7 + $0x14] ss:$8 sps:$4 sm:$0xff]   ;;  %s2315_s27 = sshll.u32 %s3824_s22, 4  ;;  %s3929_s15 = sld [smem:[#allocation18_spill]]  ;;  %s3844_s27 = int_to_ptr.vmem [resolvable:$true] %s2315_s27 }
  0xab   : > { %v2939_v37 = vld [vmem:[#allocation5 + $0x104] ss:$8 sps:$4 sm:$0xff]   ;;  %v469_v40 = vpack.c.bf16 %v417_v36, %v413_v35  ;;  %v2987_v42 = vld [vmem:[#allocation7] ss:$8 sps:$4 sm:$0xff]   ;;  %v2942_v46 = vld [vmem:[#allocation5 + $0x114] ss:$8 sps:$4 sm:$0xff]  }
  0xac   : > { %900 = vmatpush1.bf16.msra.mxu0 %v2900_v7  ;;  %v426_v39 = vld [vmem:[%s3603_s20 + $0x68] sm:$0xff]  ;;  %v2940_v47 = vld [vmem:[#allocation5 + $0x110] ss:$8 sps:$4 sm:$0xff]   ;;  %v421_v50 = vld [vmem:[%s3603_s20 + $0x40] sm:$0xff]  ;;  %s2302_s21 = scalar_lea.sflag [#allocation4], %s3599_s16  ;;  %s3239_s24 = scalar_lea.vmem %s3844_s27, 896 }
  0xad   : > { %901 = vmatprep.subr.bf16.mxu0 %v2901_v8  ;;  %v2985_v41 = vld [vmem:[#allocation7 + $0x4] ss:$8 sps:$4 sm:$0xff]   ;;  %v2937_v43 = vld [vmem:[#allocation5 + $0x100] ss:$8 sps:$4 sm:$0xff]   ;;  %v474_v44 = vpack.c.bf16 %v426_v39, %v422_v38  ;;  %v2990_v48 = vld [vmem:[#allocation7 + $0x10] ss:$8 sps:$4 sm:$0xff]   ;;  %p3240_p10 = scmp.ne.s32.totalorder %s3844_s27, %s3239_s24 }
  0xae   : > { %1401 = vmatprep.subr.bf16.mxu1 %v2985_v41  ;;  %v2945_v49 = vld [vmem:[#allocation5 + $0x124] ss:$8 sps:$4 sm:$0xff]   ;;  %v2993_v55 = vld [vmem:[#allocation7 + $0x20] ss:$8 sps:$4 sm:$0xff]   ;;  %v2994_v57 = vld [vmem:[#allocation7 + $0x34] ss:$8 sps:$4 sm:$0xff]  }
  0xaf   : > { %1402 = vmatpush1.bf16.msra.mxu1 %v2987_v42  ;;  %v2991_v51 = vld [vmem:[#allocation7 + $0x24] ss:$8 sps:$4 sm:$0xff]   ;;  %v2943_v58 = vld [vmem:[#allocation5 + $0x120] ss:$8 sps:$4 sm:$0xff]   ;;  %v2948_v60 = vld [vmem:[#allocation5 + $0x134] ss:$8 sps:$4 sm:$0xff]   ;;  %p3241_p5 = pnand %p3240_p10, %p3550_p3 }
  0xb0   : > { %902 = vmatpush1.bf16.msra.mxu0 %v2903_v9  ;;  %1403 = vmatprep.subr.bf16.mxu1 %v2988_v45  ;;  %v425_v52 = vld [vmem:[%s3603_s20 + $0x60] sm:$0xff]  ;;  %v430_v53 = vld [vmem:[%s3603_s20 + $0x88] sm:$0xff]  ;;  %v2946_v61 = vld [vmem:[#allocation5 + $0x130] ss:$8 sps:$4 sm:$0xff]   ;;  %s3851_s17 = scalar_lea.hbm %s3929_s15, %s2618_s23  ;;  %s3326_s13 = smov [#allocation11]  }
  0xb1   : > { %903 = vmatprep.subr.bf16.mxu0 %v2904_v10  ;;  %v434_v54 = vld [vmem:[%s3603_s20 + $0xa8] sm:$0xff]  ;;  %v473_v56 = vpack.c.bf16 %v425_v52, %v421_v50  ;;  %v2996_v62 = vld [vmem:[#allocation7 + $0x30] ss:$8 sps:$4 sm:$0xff]   ;;  %v429_v0 = vld [vmem:[%s3603_s20 + $0x80] sm:$0xff]  ;;  %p3242_p7 = pneg %p3241_p5  ;;  %s3243_s14 = sshll.u32 %s3326_s13, 4  ;;  %s3244_s14 = int_to_ptr.vmem [resolvable:$false] %s3243_s14 }
  0xb2   : > { %v478_v59 = vpack.c.bf16 %v434_v54, %v430_v53  ;;  %v2951_v63 = vld [vmem:[#allocation5 + $0x144] ss:$8 sps:$4 sm:$0xff]   ;;  %v2999_v5 = vld [vmem:[#allocation7 + $0x40] ss:$8 sps:$4 sm:$0xff]   ;;  %v2954_v7 = vld [vmem:[#allocation5 + $0x154] ss:$8 sps:$4 sm:$0xff]   ;;  %p3246_p12 = scmp.lt.s32.totalorder %s3844_s27, %s3244_s14 }
  0xb3   : > { %1404 = vmatpush1.bf16.msra.mxu1 %v2990_v48  ;;  %v2997_v1 = vld [vmem:[#allocation7 + $0x44] ss:$8 sps:$4 sm:$0xff]   ;;  %v2949_v6 = vld [vmem:[#allocation5 + $0x140] ss:$8 sps:$4 sm:$0xff]   ;;  %v3000_v9 = vld [vmem:[#allocation7 + $0x54] ss:$8 sps:$4 sm:$0xff]  }
  0xb4   : > { %904 = vmatpush1.bf16.msra.mxu0 %v2906_v11  ;;  %1405 = vmatprep.subr.bf16.mxu1 %v2991_v51  ;;  %v433_v2 = vld [vmem:[%s3603_s20 + $0xa0] sm:$0xff]  ;;  %v438_v3 = vld [vmem:[%s3603_s20 + $0xc8] sm:$0xff]  ;;  %v3002_v11 = vld [vmem:[#allocation7 + $0x50] ss:$8 sps:$4 sm:$0xff]   ;;  %s3245_s26 = scalar_lea.vmem %s3244_s14, 1792 }
  0xb5   : > { %905 = vmatprep.subr.bf16.mxu0 %v2907_v12  ;;  %v442_v4 = vld [vmem:[%s3603_s20 + $0xe8] sm:$0xff]  ;;  %v477_v8 = vpack.c.bf16 %v433_v2, %v429_v0  ;;  %v2952_v13 = vld [vmem:[#allocation5 + $0x150] ss:$8 sps:$4 sm:$0xff]   ;;  %v437_v14 = vld [vmem:[%s3603_s20 + $0xc0] sm:$0xff]  ;;  %p3247_p1 = scmp.lt.s32.totalorder %s3245_s26, %s3239_s24 }
  0xb6   : > { %v482_v10 = vpack.c.bf16 %v442_v4, %v438_v3  ;;  %v3003_v12 = vld [vmem:[#allocation7 + $0x64] ss:$8 sps:$4 sm:$0xff]   ;;  %v2961_v35 = vld [vmem:[#allocation5 + $0x180] ss:$8 sps:$4 sm:$0xff]   ;;  %v2966_v36 = vld [vmem:[#allocation5 + $0x194] ss:$8 sps:$4 sm:$0xff]  }
  0xb7   : > { %1406 = vmatpush1.bf16.msra.mxu1 %v2993_v55  ;;  %v441_v15 = vld [vmem:[%s3603_s20 + $0xe0] sm:$0xff]  ;;  %v3014_v39 = vld [vmem:[#allocation7 + $0x90] ss:$8 sps:$4 sm:$0xff]   ;;  %v462_v45 = vld [vmem:[%s3603_s20 + $0x188] sm:$0xff]  ;;  %p3248_p2 = por %p3247_p1, %p3246_p12 }
  0xb8   : > { %906 = vmatpush1.bf16.msra.mxu0 %v2909_v16  ;;  %1407 = vmatprep.subr.bf16.mxu1 %v2994_v57  ;;  %v2957_v16 = vld [vmem:[#allocation5 + $0x164] ss:$8 sps:$4 sm:$0xff]   ;;  %v2964_v41 = vld [vmem:[#allocation5 + $0x190] ss:$8 sps:$4 sm:$0xff]   ;;  %v2967_v50 = vld [vmem:[#allocation5 + $0x1a0] ss:$8 sps:$4 sm:$0xff]  }
  0xb9   : > { %907 = vmatprep.subr.bf16.mxu0 %v2910_v17  ;;  %v446_v17 = vld [vmem:[%s3603_s20 + $0x108] sm:$0xff]  ;;  %v453_v42 = vld [vmem:[%s3603_s20 + $0x140] sm:$0xff]  ;;  %v2972_v52 = vld [vmem:[#allocation5 + $0x1b4] ss:$8 sps:$4 sm:$0xff]   ;;  %p3249_p13 = pnand %p3248_p2, %p3242_p7 }
  0xba   : > { %v3020_v53 = vld [vmem:[#allocation7 + $0xb0] ss:$8 sps:$4 sm:$0xff]   ;;  %v3021_v54 = vld [vmem:[#allocation7 + $0xc4] ss:$8 sps:$4 sm:$0xff]   ;;  %v2979_v4 = vld [vmem:[#allocation5 + $0x1e0] ss:$8 sps:$4 sm:$0xff]  }
  0xbb   : > { %1408 = vmatpush1.bf16.msra.mxu1 %v2996_v62  ;;  %v2970_v55 = vld [vmem:[#allocation5 + $0x1b0] ss:$8 sps:$4 sm:$0xff]   ;;  %v465_v57 = vld [vmem:[%s3603_s20 + $0x1a0] sm:$0xff] }
  0xbc   : > { %908 = vmatpush1.bf16.msra.mxu0 %v2912_v18  ;;  %1409 = vmatprep.subr.bf16.mxu1 %v2997_v1  ;;  %v450_v18 = vld [vmem:[%s3603_s20 + $0x128] sm:$0xff]  ;;  %v2978_v1 = vld [vmem:[#allocation5 + $0x1d4] ss:$8 sps:$4 sm:$0xff]   ;;  %v2976_v2 = vld [vmem:[#allocation5 + $0x1d0] ss:$8 sps:$4 sm:$0xff]  }
  0xbd   : > { %909 = vmatprep.subr.bf16.mxu0 %v2913_v19  ;;  %v3005_v19 = vld [vmem:[#allocation7 + $0x60] ss:$8 sps:$4 sm:$0xff]   ;;  %v2981_v3 = vld [vmem:[#allocation5 + $0x1e4] ss:$8 sps:$4 sm:$0xff]  }
  0xbf   : > { %1410 = vmatpush1.bf16.msra.mxu1 %v2999_v5  ;;  %v2984_v5 = vld [vmem:[#allocation5 + $0x1f4] ss:$8 sps:$4 sm:$0xff]  }
  0xc0   : > { %910 = vmatpush1.bf16.msra.mxu0 %v2915_v20  ;;  %1411 = vmatprep.subr.bf16.mxu1 %v3000_v9  ;;  %v3006_v20 = vld [vmem:[#allocation7 + $0x74] ss:$8 sps:$4 sm:$0xff]  }
  0xc1   : > { %911 = vmatprep.subr.bf16.mxu0 %v2916_v21  ;;  %v2955_v21 = vld [vmem:[#allocation5 + $0x160] ss:$8 sps:$4 sm:$0xff]   ;;  %v424_v9 = vld [vmem:[%s3603_s20 + $0x58] sm:$0xff] }
  0xc3   : > { %1412 = vmatpush1.bf16.msra.mxu1 %v3002_v11 }
  0xc4   : > { %912 = vmatpush1.bf16.msra.mxu0 %v2918_v22  ;;  %v2960_v22 = vld [vmem:[#allocation5 + $0x174] ss:$8 sps:$4 sm:$0xff]   ;;  %1413 = vmatprep.subr.bf16.mxu1 %v3003_v12 }
  0xc5   : > { %913 = vmatprep.subr.bf16.mxu0 %v2919_v23  ;;  %v481_v23 = vpack.c.bf16 %v441_v15, %v437_v14  ;;  %v427_v14 = vld [vmem:[%s3603_s20 + $0x70] sm:$0xff]  ;;  %v432_v15 = vld [vmem:[%s3603_s20 + $0x98] sm:$0xff] }
  0xc7   : > { %1414 = vmatpush1.bf16.msra.mxu1 %v3005_v19  ;;  %v431_v19 = vld [vmem:[%s3603_s20 + $0x90] sm:$0xff] }
  0xc8   : > { %914 = vmatpush1.bf16.msra.mxu0 %v2921_v24  ;;  %v486_v24 = vpack.c.bf16 %v450_v18, %v446_v17  ;;  %1415 = vmatprep.subr.bf16.mxu1 %v3006_v20  ;;  %v435_v20 = vld [vmem:[%s3603_s20 + $0xb0] sm:$0xff] }
  0xc9   : > { %915 = vmatprep.subr.bf16.mxu0 %v2922_v25  ;;  %v3008_v25 = vld [vmem:[#allocation7 + $0x70] ss:$8 sps:$4 sm:$0xff]  }
  0xcb   : > { %1416 = vmatpush1.bf16.msra.mxu1 %v3008_v25  ;;  %v439_v25 = vld [vmem:[%s3603_s20 + $0xd0] sm:$0xff] }
  0xcc   : > { %916 = vmatpush1.bf16.msra.mxu0 %v2924_v26  ;;  %v3009_v26 = vld [vmem:[#allocation7 + $0x84] ss:$8 sps:$4 sm:$0xff]  }
  0xcd   : > { %917 = vmatprep.subr.bf16.mxu0 %v2925_v27  ;;  %v2958_v27 = vld [vmem:[#allocation5 + $0x170] ss:$8 sps:$4 sm:$0xff]   ;;  %1417 = vmatprep.subr.bf16.mxu1 %v3009_v26 }
  0xce   : > { %v443_v26 = vld [vmem:[%s3603_s20 + $0xf0] sm:$0xff] }
  0xd0   : > { %918 = vmatpush1.bf16.msra.mxu0 %v2927_v28  ;;  %v445_v28 = vld [vmem:[%s3603_s20 + $0x100] sm:$0xff] }
  0xd1   : > { %919 = vmatprep.subr.bf16.mxu0 %v2928_v29  ;;  %v449_v29 = vld [vmem:[%s3603_s20 + $0x120] sm:$0xff] }
  0xd4   : > { %920 = vmatpush1.bf16.msra.mxu0 %v2930_v30  ;;  %v2963_v30 = vld [vmem:[#allocation5 + $0x184] ss:$8 sps:$4 sm:$0xff]  }
  0xd5   : > { %921 = vmatprep.subr.bf16.mxu0 %v2931_v31  ;;  %v454_v31 = vld [vmem:[%s3603_s20 + $0x148] sm:$0xff] }
  0xd8   : > { %922 = vmatpush1.bf16.msra.mxu0 %v2933_v32  ;;  %v458_v32 = vld [vmem:[%s3603_s20 + $0x168] sm:$0xff] }
  0xd9   : > { %923 = vmatprep.subr.bf16.mxu0 %v2934_v33  ;;  %v3011_v33 = vld [vmem:[#allocation7 + $0x80] ss:$8 sps:$4 sm:$0xff]   ;;  %v490_v38 = vpack.c.bf16 %v458_v32, %v454_v31  ;;  %v447_v31 = vld [vmem:[%s3603_s20 + $0x110] sm:$0xff] }
  0xda   : > { %1418 = vmatpush1.bf16.msra.mxu1 %v3011_v33  ;;  %v451_v32 = vld [vmem:[%s3603_s20 + $0x130] sm:$0xff]  ;;  %v456_v33 = vld [vmem:[%s3603_s20 + $0x158] sm:$0xff] }
  0xdc   : > { %924 = vmatpush1.bf16.msra.mxu0 %v2936_v34  ;;  %v3012_v34 = vld [vmem:[#allocation7 + $0x94] ss:$8 sps:$4 sm:$0xff]  }
  0xdd   : > { %996 = vmatprep.subr.bf16.mxu0 %v2939_v37  ;;  %v485_v37 = vpack.c.bf16 %v449_v29, %v445_v28  ;;  %1419 = vmatprep.subr.bf16.mxu1 %v3012_v34  ;;  %v452_v28 = vld [vmem:[%s3603_s20 + $0x138] sm:$0xff]  ;;  %v483_v29 = vpack.c.bf16 %v443_v26, %v439_v25 }
  0xde   : > { %1420 = vmatpush1.bf16.msra.mxu1 %v3014_v39  ;;  %v460_v34 = vld [vmem:[%s3603_s20 + $0x178] sm:$0xff] }
  0xdf   : > { %926 = vmatmul.mubr.bf16.vlgmr.msra.gmra.mrb[0].mxu0 %v469_v40  ;;  %v3015_v40 = vld [vmem:[#allocation7 + $0xa4] ss:$8 sps:$4 sm:$0xff]   ;;  %v464_v39 = vld [vmem:[%s3603_s20 + $0x198] sm:$0xff] }
  0xe0   : > { %997 = vmatpush1.bf16.msra.mxu0 %v2937_v43  ;;  %935 = vmatprep.mubr.bf16.mxu0 %v474_v44  ;;  %v457_v43 = vld [vmem:[%s3603_s20 + $0x160] sm:$0xff] }
  0xe1   : > { %998 = vmatprep.subr.bf16.mxu0 %v2942_v46  ;;  %v2969_v44 = vld [vmem:[#allocation5 + $0x1a4] ss:$8 sps:$4 sm:$0xff]   ;;  %v489_v48 = vpack.c.bf16 %v457_v43, %v453_v42  ;;  %1421 = vmatprep.subr.bf16.mxu1 %v3015_v40  ;;  %v468_v40 = vld [vmem:[%s3603_s20 + $0x1b8] sm:$0xff]  ;;  %v463_v43 = vld [vmem:[%s3603_s20 + $0x190] sm:$0xff] }
  0xe2   : > { %v466_v46 = vld [vmem:[%s3603_s20 + $0x1a8] sm:$0xff]  ;;  %v496_v42 = vpack.c.bf16 %v468_v40, %v464_v39 }
  0xe3   : > { %v494_v51 = vpack.c.bf16 %v466_v46, %v462_v45  ;;  %v3024_v46 = vld [vmem:[#allocation7 + $0xd4] ss:$8 sps:$4 sm:$0xff]   ;;  %v3039_v39 = vld [vmem:[#allocation8 + $0x20] ss:$8 sps:$4 sm:$0xff]  }
  0xe4   : > { %999 = vmatpush1.bf16.msra.mxu0 %v2940_v47  ;;  %v3017_v47 = vld [vmem:[#allocation7 + $0xa0] ss:$8 sps:$4 sm:$0xff]  }
  0xe5   : > { %1000 = vmatprep.subr.bf16.mxu0 %v2945_v49  ;;  %v3018_v49 = vld [vmem:[#allocation7 + $0xb4] ss:$8 sps:$4 sm:$0xff]   ;;  %1422 = vmatpush1.bf16.msra.mxu1 %v3017_v47  ;;  %v3026_v47 = vld [vmem:[#allocation7 + $0xd0] ss:$8 sps:$4 sm:$0xff]  }
  0xe6   : > { %1423 = vmatprep.subr.bf16.mxu1 %v3018_v49  ;;  %v3029_v49 = vld [vmem:[#allocation7 + $0xe0] ss:$8 sps:$4 sm:$0xff]  }
  0xe7   : > { %936 = vmatmul.mubr.bf16.gmra.mrb[4].mxu0 %v473_v56  ;;  %v461_v56 = vld [vmem:[%s3603_s20 + $0x180] sm:$0xff] }
  0xe8   : > { %1001 = vmatpush1.bf16.msra.mxu0 %v2943_v58  ;;  %945 = vmatprep.mubr.bf16.mxu0 %v478_v59  ;;  %v2975_v58 = vld [vmem:[#allocation5 + $0x1c4] ss:$8 sps:$4 sm:$0xff]   ;;  %v416_v59 = vld [vmem:[%s3603_s20 + $0x18] sm:$0xff]  ;;  %v493_v62 = vpack.c.bf16 %v465_v57, %v461_v56  ;;  %v561_v56 = vld [vmem:[%s3898_s2] sm:$0x3] }
  0xe9   : > { %1002 = vmatprep.subr.bf16.mxu0 %v2948_v60  ;;  %v420_v60 = vld [vmem:[%s3603_s20 + $0x38] sm:$0xff]  ;;  %1424 = vmatpush1.bf16.msra.mxu1 %v3020_v53  ;;  %v563_v53 = vlaneseq }
  0xea   : > { %1425 = vmatprep.subr.bf16.mxu1 %v3021_v54  ;;  %v472_v0 = vpack.c.bf16 %v420_v60, %v416_v59 }
  0xeb   : > { %v564_v54 = vshrl.u32 %v563_v53, 7 }
  0xec   : > { %1003 = vmatpush1.bf16.msra.mxu0 %v2946_v61  ;;  %v3023_v61 = vld [vmem:[#allocation7 + $0xc0] ss:$8 sps:$4 sm:$0xff]  }
  0xed   : > { %1004 = vmatprep.subr.bf16.mxu0 %v2951_v63  ;;  %v2973_v63 = vld [vmem:[#allocation5 + $0x1c0] ss:$8 sps:$4 sm:$0xff]   ;;  %1426 = vmatpush1.bf16.msra.mxu1 %v3023_v61  ;;  %v3678_v57 = vsub.s32 1, %v564_v54 }
  0xee   : > { %1427 = vmatprep.subr.bf16.mxu1 %v3024_v46 }
  0xef   : > { %946 = vmatmul.mubr.bf16.gmra.mrb[8].mxu0 %v477_v8  ;;  %v419_v8 = vld [vmem:[%s3603_s20 + $0x30] sm:$0xff]  ;;  %v3684_v59 = vrot.slane %v561_v56, %v3678_v57 }
  0xf0   : > { %1005 = vmatpush1.bf16.msra.mxu0 %v2949_v6  ;;  %955 = vmatprep.mubr.bf16.mxu0 %v482_v10  ;;  %v2982_v6 = vld [vmem:[#allocation5 + $0x1f0] ss:$8 sps:$4 sm:$0xff]  }
  0xf1   : > { %1006 = vmatprep.subr.bf16.mxu0 %v2954_v7  ;;  %v415_v7 = vld [vmem:[%s3603_s20 + $0x10] sm:$0xff]  ;;  %v428_v10 = vld [vmem:[%s3603_s20 + $0x78] sm:$0xff]  ;;  %1428 = vmatpush1.bf16.msra.mxu1 %v3026_v47 }
  0xf2   : > { %v471_v11 = vpack.c.bf16 %v419_v8, %v415_v7  ;;  %v476_v12 = vpack.c.bf16 %v428_v10, %v424_v9 }
  0xf4   : > { %1007 = vmatpush1.bf16.msra.mxu0 %v2952_v13  ;;  %v423_v13 = vld [vmem:[%s3603_s20 + $0x50] sm:$0xff] }
  0xf5   : > { %1008 = vmatprep.subr.bf16.mxu0 %v2957_v16  ;;  %v436_v16 = vld [vmem:[%s3603_s20 + $0xb8] sm:$0xff]  ;;  %v475_v17 = vpack.c.bf16 %v427_v14, %v423_v13 }
  0xf6   : > { %v480_v18 = vpack.c.bf16 %v436_v16, %v432_v15 }
  0xf7   : > { %956 = vmatmul.mubr.bf16.gmra.mrb[12].mxu0 %v481_v23  ;;  %v479_v23 = vpack.c.bf16 %v435_v20, %v431_v19  ;;  %v3038_v20 = vld [vmem:[#allocation8 + $0x14] ss:$8 sps:$4 sm:$0xff]  }
  0xf8   : > { %1009 = vmatpush1.bf16.msra.mxu0 %v2955_v21  ;;  %965 = vmatprep.mubr.bf16.mxu0 %v486_v24  ;;  %v440_v21 = vld [vmem:[%s3603_s20 + $0xd8] sm:$0xff] }
  0xf9   : > { %1010 = vmatprep.subr.bf16.mxu0 %v2960_v22  ;;  %v444_v22 = vld [vmem:[%s3603_s20 + $0xf8] sm:$0xff] }
  0xfa   : > { %v484_v24 = vpack.c.bf16 %v444_v22, %v440_v21 }
  0xfc   : > { %1011 = vmatpush1.bf16.msra.mxu0 %v2958_v27  ;;  %v448_v27 = vld [vmem:[%s3603_s20 + $0x118] sm:$0xff] }
  0xfd   : > { %1012 = vmatprep.subr.bf16.mxu0 %v2963_v30  ;;  %v488_v30 = vpack.c.bf16 %v452_v28, %v448_v27  ;;  %v3036_v27 = vld [vmem:[#allocation8 + $0x10] ss:$8 sps:$4 sm:$0xff]  }
  0xff   : > { %966 = vmatmul.mubr.bf16.gmra.mrb[16].mxu0 %v485_v37  ;;  %v455_v37 = vld [vmem:[%s3603_s20 + $0x150] sm:$0xff] }
 0x100   : > { %1013 = vmatpush1.bf16.msra.mxu0 %v2961_v35  ;;  %975 = vmatprep.mubr.bf16.mxu0 %v490_v38  ;;  %v487_v35 = vpack.c.bf16 %v451_v32, %v447_v31  ;;  %v459_v38 = vld [vmem:[%s3603_s20 + $0x170] sm:$0xff] }
 0x101   : > { %1014 = vmatprep.subr.bf16.mxu0 %v2966_v36  ;;  %v492_v36 = vpack.c.bf16 %v460_v34, %v456_v33 }
 0x104   : > { %1015 = vmatpush1.bf16.msra.mxu0 %v2964_v41  ;;  %v491_v41 = vpack.c.bf16 %v459_v38, %v455_v37 }
 0x105   : > { %1016 = vmatprep.subr.bf16.mxu0 %v2969_v44  ;;  %v467_v44 = vld [vmem:[%s3603_s20 + $0x1b0] sm:$0xff] }
 0x106   : > { %v495_v45 = vpack.c.bf16 %v467_v44, %v463_v43 }
 0x107   : > { %976 = vmatmul.mubr.bf16.gmra.mrb[20].mxu0 %v489_v48  ;;  %v3027_v48 = vld [vmem:[#allocation7 + $0xe4] ss:$8 sps:$4 sm:$0xff]  }
 0x108   : > { %1017 = vmatpush1.bf16.msra.mxu0 %v2967_v50  ;;  %985 = vmatprep.mubr.bf16.mxu0 %v494_v51  ;;  %v3030_v50 = vld [vmem:[#allocation7 + $0xf4] ss:$8 sps:$4 sm:$0xff]   ;;  %v3032_v51 = vld [vmem:[#allocation7 + $0xf0] ss:$8 sps:$4 sm:$0xff]  }
 0x109   : > { %1018 = vmatprep.subr.bf16.mxu0 %v2972_v52  ;;  %1429 = vmatprep.subr.bf16.mxu1 %v3027_v48  ;;  %v3035_v52 = vld [vmem:[#allocation8 + $0x4] ss:$8 sps:$4 sm:$0xff]  }
 0x10a   : > { %1430 = vmatpush1.bf16.msra.mxu1 %v3029_v49  ;;  %v3042_v49 = vld [vmem:[#allocation8 + $0x30] ss:$8 sps:$4 sm:$0xff]  }
 0x10b   : > { %1431 = vmatprep.subr.bf16.mxu1 %v3030_v50 }
 0x10c   : > { %1019 = vmatpush1.bf16.msra.mxu0 %v2970_v55  ;;  %v3673_v55 = vsub.s32 0, %v564_v54 }
 0x10d   : > { %1020 = vmatprep.subr.bf16.mxu0 %v2975_v58 }
 0x10e   : > { %1432 = vmatpush1.bf16.msra.mxu1 %v3032_v51  ;;  %v3681_v58 = vrot.slane %v561_v56, %v3673_v55  ;;  %v3047_v51 = vld [vmem:[#allocation8 + $0x44] ss:$8 sps:$4 sm:$0xff]  }
 0x10f   : > { %986 = vmatmul.mubr.bf16.gmra.mrb[24].mxu0 %v493_v62  ;;  %1806 = vmatprep.subr.bf16.mxu1 %v3035_v52 }
 0x110   : > { %1021 = vmatpush1.bf16.msra.mxu0 %v2973_v63  ;;  %1028 = vmatprep.mubr.bf16.mxu0 %v472_v0 }
 0x111   : > { %1022 = vmatprep.subr.bf16.mxu0 %v2978_v1 }
 0x114   : > { %1023 = vmatpush1.bf16.msra.mxu0 %v2976_v2 }
 0x115   : > { %1024 = vmatprep.subr.bf16.mxu0 %v2981_v3 }
 0x118   : > { %1025 = vmatpush1.bf16.msra.mxu0 %v2979_v4 }
 0x119   : > { %1026 = vmatprep.subr.bf16.mxu0 %v2984_v5 }
 0x11c   : > { %1027 = vmatpush1.bf16.msra.mxu0 %v2982_v6 }
 0x11f   : > { %1029 = vmatmul.mubr.bf16.vlgmr.msra.gmra.mrb[0].mxu0 %v471_v11 }
 0x120   : > { %1038 = vmatprep.mubr.bf16.mxu0 %v476_v12 }
 0x127   : > { %1039 = vmatmul.mubr.bf16.gmra.mrb[4].mxu0 %v475_v17  ;;  %v3033_v17 = vld [vmem:[#allocation8] ss:$8 sps:$4 sm:$0xff]  }
 0x128   : > { %1048 = vmatprep.mubr.bf16.mxu0 %v480_v18 }
 0x12f   : > { %1049 = vmatmul.mubr.bf16.gmra.mrb[8].mxu0 %v479_v23 }
 0x130   : > { %1058 = vmatprep.mubr.bf16.mxu0 %v484_v24 }
 0x137   : > { %1059 = vmatmul.mubr.bf16.gmra.mrb[12].mxu0 %v483_v29  ;;  %v3041_v29 = vld [vmem:[#allocation8 + $0x24] ss:$8 sps:$4 sm:$0xff]  }
 0x138   : > { %1068 = vmatprep.mubr.bf16.mxu0 %v488_v30 }
 0x13f   : > { %1069 = vmatmul.mubr.bf16.gmra.mrb[16].mxu0 %v487_v35 }
 0x140   : > { %1078 = vmatprep.mubr.bf16.mxu0 %v492_v36 }
 0x147   : > { %1079 = vmatmul.mubr.bf16.gmra.mrb[20].mxu0 %v491_v41 }
 0x148   : > { %1088 = vmatprep.mubr.bf16.mxu0 %v496_v42  ;;  %v3044_v42 = vld [vmem:[#allocation8 + $0x34] ss:$8 sps:$4 sm:$0xff]  }
 0x14f   : > { %1089 = vmatmul.mubr.bf16.gmra.mrb[24].mxu0 %v495_v45 }
 0x1f2   : > { %v1030_v60 = vpop.f32.mrb[0].mxu0 }
 0x1f3   : > { %v2735_v61 = vadd.f32 %v1030_v60, %v3681_v58  ;;  %v1032_v62 = vpop.f32.mrb[1].mxu0 }
 0x1f4   : > { %v2736_v63 = vadd.f32 %v1032_v62, %v3684_v59  ;;  %v1034_v0 = vpop.f32.mrb[2].mxu0 }
 0x1f5   : > { %v1127_v1 = vmul.f32 0.01, %v2735_v61  ;;  %v2737_v2 = vadd.f32 %v1034_v0, %v3681_v58  ;;  %v1036_v3 = vpop.f32.mrb[3].mxu0  ;;  %vm1099_vm0 = vcmp.gt.f32.partialorder %v2735_v61, 0.0 }
 0x1f6   : > { %v1128_v4 = vmul.f32 0.01, %v2736_v63  ;;  %v2738_v5 = vadd.f32 %v1036_v3, %v3684_v59  ;;  %vm1100_vm2 = vcmp.gt.f32.partialorder %v2736_v63, 0.0 }
 0x1f7   : > { %vm1101_vm1 = vcmp.gt.f32.partialorder %v2737_v2, 0.0  ;;  %v1129_v6 = vmul.f32 0.01, %v2737_v2  ;;  %v1155_v8 = vsel %vm1099_vm0, %v2735_v61, %v1127_v1  ;;  %v3045_v1 = vld [vmem:[#allocation8 + $0x40] ss:$8 sps:$4 sm:$0xff]  }
 0x1f8   : > { %v1130_v7 = vmul.f32 0.01, %v2738_v5  ;;  %vm1102_vm3 = vcmp.gt.f32.partialorder %v2738_v5, 0.0  ;;  %v1156_v11 = vsel %vm1100_vm2, %v2736_v63, %v1128_v4  ;;  %v3050_v4 = vld [vmem:[#allocation8 + $0x54] ss:$8 sps:$4 sm:$0xff]  }
 0x1f9   : > { %v1157_v9 = vsel %vm1101_vm1, %v2737_v2, %v1129_v6 }
 0x1fa   : > { %v1040_v10 = vpop.f32.mrb[4].mxu0  ;;  %v1158_v12 = vsel %vm1102_vm3, %v2738_v5, %v1130_v7  ;;  %v1183_v13 = vpack.c.bf16 %v1157_v9, %v1155_v8 }
 0x1fb   : > { %v2739_v14 = vadd.f32 %v1040_v10, %v3681_v58  ;;  %v1042_v15 = vpop.f32.mrb[5].mxu0  ;;  %v1184_v16 = vpack.c.bf16 %v1158_v12, %v1156_v11  ;;  %v3048_v11 = vld [vmem:[#allocation8 + $0x50] ss:$8 sps:$4 sm:$0xff]  }
 0x1fc   : > { %v2740_v18 = vadd.f32 %v1042_v15, %v3684_v59  ;;  %v1044_v19 = vpop.f32.mrb[6].mxu0 }
 0x1fd   : > { %v1131_v21 = vmul.f32 0.01, %v2739_v14  ;;  %v2741_v22 = vadd.f32 %v1044_v19, %v3681_v58  ;;  %v1046_v23 = vpop.f32.mrb[7].mxu0  ;;  %1433 = vmatprep.mubr.bf16.mxu1 %v1184_v16  ;;  %vm1103_vm4 = vcmp.gt.f32.partialorder %v2739_v14, 0.0 }
 0x1fe   : > { %v1132_v24 = vmul.f32 0.01, %v2740_v18  ;;  %v2742_v25 = vadd.f32 %v1046_v23, %v3684_v59  ;;  %1434 = vmatmul.mubr.bf16.vlgmr.msra.gmra.mrb[0].mxu1 %v1183_v13  ;;  %vm1104_vm5 = vcmp.gt.f32.partialorder %v2740_v18, 0.0  ;;  %v3053_v13 = vld [vmem:[#allocation8 + $0x64] ss:$8 sps:$4 sm:$0xff]  }
 0x1ff   : > { %vm1105_vm6 = vcmp.gt.f32.partialorder %v2741_v22, 0.0  ;;  %v1133_v26 = vmul.f32 0.01, %v2741_v22  ;;  %1807 = vmatpush1.bf16.msra.mxu1 %v3033_v17  ;;  %v1159_v30 = vsel %vm1103_vm4, %v2739_v14, %v1131_v21  ;;  %v3051_v23 = vld [vmem:[#allocation8 + $0x60] ss:$8 sps:$4 sm:$0xff]  }
 0x200   : > { %vm1106_vm7 = vcmp.gt.f32.partialorder %v2742_v25, 0.0  ;;  %v1134_v28 = vmul.f32 0.01, %v2742_v25  ;;  %1808 = vmatprep.subr.bf16.mxu1 %v3038_v20  ;;  %v1160_v33 = vsel %vm1104_vm5, %v2740_v18, %v1132_v24 }
 0x201   : > { %v1161_v31 = vsel %vm1105_vm6, %v2741_v22, %v1133_v26  ;;  %v3056_v26 = vld [vmem:[#allocation8 + $0x74] ss:$8 sps:$4 sm:$0xff]  }
 0x202   : > { %v1050_v32 = vpop.f32.mrb[8].mxu0  ;;  %v1162_v34 = vsel %vm1106_vm7, %v2742_v25, %v1134_v28  ;;  %v1185_v35 = vpack.c.bf16 %v1161_v31, %v1159_v30 }
 0x203   : > { %v2743_v36 = vadd.f32 %v1050_v32, %v3681_v58  ;;  %v1052_v37 = vpop.f32.mrb[9].mxu0  ;;  %v1186_v38 = vpack.c.bf16 %v1162_v34, %v1160_v33  ;;  %1809 = vmatpush1.bf16.msra.mxu1 %v3036_v27  ;;  %v3054_v33 = vld [vmem:[#allocation8 + $0x70] ss:$8 sps:$4 sm:$0xff]  }
 0x204   : > { %v2744_v40 = vadd.f32 %v1052_v37, %v3684_v59  ;;  %v1054_v41 = vpop.f32.mrb[10].mxu0  ;;  %1810 = vmatprep.subr.bf16.mxu1 %v3041_v29 }
 0x205   : > { %v1135_v43 = vmul.f32 0.01, %v2743_v36  ;;  %v2745_v44 = vadd.f32 %v1054_v41, %v3681_v58  ;;  %v1056_v45 = vpop.f32.mrb[11].mxu0  ;;  %1443 = vmatprep.mubr.bf16.mxu1 %v1186_v38  ;;  %vm1107_vm8 = vcmp.gt.f32.partialorder %v2743_v36, 0.0 }
 0x206   : > { %v1136_v46 = vmul.f32 0.01, %v2744_v40  ;;  %v2746_v47 = vadd.f32 %v1056_v45, %v3684_v59  ;;  %1444 = vmatmul.mubr.bf16.gmra.mrb[4].mxu1 %v1185_v35  ;;  %vm1108_vm9 = vcmp.gt.f32.partialorder %v2744_v40, 0.0  ;;  %v3059_v35 = vld [vmem:[#allocation8 + $0x84] ss:$8 sps:$4 sm:$0xff]  }
 0x207   : > { %vm1109_vm10 = vcmp.gt.f32.partialorder %v2745_v44, 0.0  ;;  %v1137_v48 = vmul.f32 0.01, %v2745_v44  ;;  %1811 = vmatpush1.bf16.msra.mxu1 %v3039_v39  ;;  %v1163_v52 = vsel %vm1107_vm8, %v2743_v36, %v1135_v43  ;;  %v3057_v45 = vld [vmem:[#allocation8 + $0x80] ss:$8 sps:$4 sm:$0xff]  }
 0x208   : > { %vm1110_vm11 = vcmp.gt.f32.partialorder %v2746_v47, 0.0  ;;  %v1138_v50 = vmul.f32 0.01, %v2746_v47  ;;  %1812 = vmatprep.subr.bf16.mxu1 %v3044_v42  ;;  %v1164_v56 = vsel %vm1108_vm9, %v2744_v40, %v1136_v46 }
 0x209   : > { %v1165_v53 = vsel %vm1109_vm10, %v2745_v44, %v1137_v48  ;;  %v3062_v48 = vld [vmem:[#allocation8 + $0x94] ss:$8 sps:$4 sm:$0xff]  }
 0x20a   : > { %v1060_v54 = vpop.f32.mrb[12].mxu0  ;;  %v1166_v60 = vsel %vm1110_vm11, %v2746_v47, %v1138_v50  ;;  %v1187_v61 = vpack.c.bf16 %v1165_v53, %v1163_v52 }
 0x20b   : > { %v2747_v62 = vadd.f32 %v1060_v54, %v3681_v58  ;;  %v1062_v63 = vpop.f32.mrb[13].mxu0  ;;  %v1188_v0 = vpack.c.bf16 %v1166_v60, %v1164_v56  ;;  %1813 = vmatpush1.bf16.msra.mxu1 %v3042_v49  ;;  %v3060_v56 = vld [vmem:[#allocation8 + $0x90] ss:$8 sps:$4 sm:$0xff]  }
 0x20c   : > { %v2748_v2 = vadd.f32 %v1062_v63, %v3684_v59  ;;  %v1064_v3 = vpop.f32.mrb[14].mxu0  ;;  %1814 = vmatprep.subr.bf16.mxu1 %v3047_v51 }
 0x20d   : > { %v1139_v5 = vmul.f32 0.01, %v2747_v62  ;;  %v2749_v6 = vadd.f32 %v1064_v3, %v3681_v58  ;;  %v1066_v7 = vpop.f32.mrb[15].mxu0  ;;  %1453 = vmatprep.mubr.bf16.mxu1 %v1188_v0  ;;  %vm1111_vm12 = vcmp.gt.f32.partialorder %v2747_v62, 0.0 }
 0x20e   : > { %v1140_v8 = vmul.f32 0.01, %v2748_v2  ;;  %v2750_v9 = vadd.f32 %v1066_v7, %v3684_v59  ;;  %1454 = vmatmul.mubr.bf16.gmra.mrb[8].mxu1 %v1187_v61  ;;  %vm1112_vm13 = vcmp.gt.f32.partialorder %v2748_v2, 0.0  ;;  %v3065_v61 = vld [vmem:[#allocation8 + $0xa4] ss:$8 sps:$4 sm:$0xff]  }
 0x20f   : > { %vm1113_vm14 = vcmp.gt.f32.partialorder %v2749_v6, 0.0  ;;  %v1141_v10 = vmul.f32 0.01, %v2749_v6  ;;  %1815 = vmatpush1.bf16.msra.mxu1 %v3045_v1  ;;  %v1167_v14 = vsel %vm1111_vm12, %v2747_v62, %v1139_v5  ;;  %v3063_v7 = vld [vmem:[#allocation8 + $0xa0] ss:$8 sps:$4 sm:$0xff]  }
 0x210   : > { %vm1114_vm15 = vcmp.gt.f32.partialorder %v2750_v9, 0.0  ;;  %v1142_v12 = vmul.f32 0.01, %v2750_v9  ;;  %1816 = vmatprep.subr.bf16.mxu1 %v3050_v4  ;;  %v1168_v17 = vsel %vm1112_vm13, %v2748_v2, %v1140_v8 }
 0x211   : > { %v1169_v15 = vsel %vm1113_vm14, %v2749_v6, %v1141_v10  ;;  %v3068_v10 = vld [vmem:[#allocation8 + $0xb4] ss:$8 sps:$4 sm:$0xff]  }
 0x212   : > { %v1070_v16 = vpop.f32.mrb[16].mxu0  ;;  %v1170_v18 = vsel %vm1114_vm15, %v2750_v9, %v1142_v12  ;;  %v1189_v19 = vpack.c.bf16 %v1169_v15, %v1167_v14 }
 0x213   : > { %v2751_v20 = vadd.f32 %v1070_v16, %v3681_v58  ;;  %v1072_v21 = vpop.f32.mrb[17].mxu0  ;;  %v1190_v22 = vpack.c.bf16 %v1170_v18, %v1168_v17  ;;  %1817 = vmatpush1.bf16.msra.mxu1 %v3048_v11  ;;  %v3066_v17 = vld [vmem:[#allocation8 + $0xb0] ss:$8 sps:$4 sm:$0xff]  }
 0x214   : > { %v2752_v24 = vadd.f32 %v1072_v21, %v3684_v59  ;;  %v1074_v25 = vpop.f32.mrb[18].mxu0  ;;  %1818 = vmatprep.subr.bf16.mxu1 %v3053_v13 }
 0x215   : > { %v1143_v27 = vmul.f32 0.01, %v2751_v20  ;;  %v2753_v28 = vadd.f32 %v1074_v25, %v3681_v58  ;;  %v1076_v29 = vpop.f32.mrb[19].mxu0  ;;  %1463 = vmatprep.mubr.bf16.mxu1 %v1190_v22  ;;  %vm1115_vm0 = vcmp.gt.f32.partialorder %v2751_v20, 0.0  ;;  %v3069_v25 = vld [vmem:[#allocation8 + $0xc0] ss:$8 sps:$4 sm:$0xff]  }
 0x216   : > { %v1144_v30 = vmul.f32 0.01, %v2752_v24  ;;  %v2754_v31 = vadd.f32 %v1076_v29, %v3684_v59  ;;  %1464 = vmatmul.mubr.bf16.gmra.mrb[12].mxu1 %v1189_v19  ;;  %vm1116_vm1 = vcmp.gt.f32.partialorder %v2752_v24, 0.0  ;;  %v3071_v19 = vld [vmem:[#allocation8 + $0xc4] ss:$8 sps:$4 sm:$0xff]  }
 0x217   : > { %vm1117_vm2 = vcmp.gt.f32.partialorder %v2753_v28, 0.0  ;;  %v1145_v32 = vmul.f32 0.01, %v2753_v28  ;;  %1819 = vmatpush1.bf16.msra.mxu1 %v3051_v23  ;;  %v1171_v36 = vsel %vm1115_vm0, %v2751_v20, %v1143_v27  ;;  %v3077_v27 = vld [vmem:[#allocation8 + $0xe4] ss:$8 sps:$4 sm:$0xff]  }
 0x218   : > { %vm1118_vm3 = vcmp.gt.f32.partialorder %v2754_v31, 0.0  ;;  %v1146_v34 = vmul.f32 0.01, %v2754_v31  ;;  %1820 = vmatprep.subr.bf16.mxu1 %v3056_v26  ;;  %v1172_v39 = vsel %vm1116_vm1, %v2752_v24, %v1144_v30  ;;  %v3072_v26 = vld [vmem:[#allocation8 + $0xd0] ss:$8 sps:$4 sm:$0xff]  }
 0x219   : > { %v1173_v37 = vsel %vm1117_vm2, %v2753_v28, %v1145_v32  ;;  %v3075_v28 = vld [vmem:[#allocation8 + $0xe0] ss:$8 sps:$4 sm:$0xff]   ;;  %v3080_v29 = vld [vmem:[#allocation8 + $0xf4] ss:$8 sps:$4 sm:$0xff]   ;;  %v3078_v30 = vld [vmem:[#allocation8 + $0xf0] ss:$8 sps:$4 sm:$0xff]  }
 0x21a   : > { %v1080_v38 = vpop.f32.mrb[20].mxu0  ;;  %v1174_v40 = vsel %vm1118_vm3, %v2754_v31, %v1146_v34  ;;  %v1191_v41 = vpack.c.bf16 %v1173_v37, %v1171_v36  ;;  %v3081_v31 = vld [vmem:[#allocation10 + $0x40] sm:$0xff]   ;;  %v3714_v34 = vld [vmem:[#allocation10 + $0x8] sm:$0xff]   ;;  %v3719_v36 = vld [vmem:[#allocation10 + $0x10] sm:$0xff]  }
 0x21b   : > { %v2755_v42 = vadd.f32 %v1080_v38, %v3681_v58  ;;  %v1082_v43 = vpop.f32.mrb[21].mxu0  ;;  %v1192_v44 = vpack.c.bf16 %v1174_v40, %v1172_v39  ;;  %1821 = vmatpush1.bf16.msra.mxu1 %v3054_v33  ;;  %v3082_v32 = vld [vmem:[#allocation10] sm:$0xff]   ;;  %v3083_v33 = vld [vmem:[#allocation10 + $0x48] sm:$0xff]   ;;  %2661 = vmatprep.subr.bf16.mxu0 %v3081_v31  ;;  %v3722_v37 = vld [vmem:[#allocation10 + $0x58] sm:$0xff]  }
 0x21c   : > { %v2756_v46 = vadd.f32 %v1082_v43, %v3684_v59  ;;  %v1084_v47 = vpop.f32.mrb[22].mxu0  ;;  %1822 = vmatprep.subr.bf16.mxu1 %v3059_v35  ;;  %2662 = vmatpush3.bf16.msra.mxu0 %v3082_v32  ;;  %v3716_v35 = vld [vmem:[#allocation10 + $0x50] sm:$0xff]   ;;  %v3725_v38 = vld [vmem:[#allocation10 + $0x18] sm:$0xff]   ;;  %v3728_v39 = vld [vmem:[#allocation10 + $0x60] sm:$0xff]  }
 0x21d   : > { %v1147_v49 = vmul.f32 0.01, %v2755_v42  ;;  %v2757_v50 = vadd.f32 %v1084_v47, %v3681_v58  ;;  %v1086_v51 = vpop.f32.mrb[23].mxu0  ;;  %1473 = vmatprep.mubr.bf16.mxu1 %v1192_v44  ;;  %vm1119_vm4 = vcmp.gt.f32.partialorder %v2755_v42, 0.0  ;;  %2663 = vmatprep.subr.bf16.mxu0 %v3083_v33  ;;  %v3731_v40 = vld [vmem:[#allocation10 + $0x20] sm:$0xff]  }
 0x21e   : > { %v1148_v52 = vmul.f32 0.01, %v2756_v46  ;;  %v2758_v53 = vadd.f32 %v1086_v51, %v3684_v59  ;;  %1474 = vmatmul.mubr.bf16.gmra.mrb[16].mxu1 %v1191_v41  ;;  %vm1120_vm5 = vcmp.gt.f32.partialorder %v2756_v46, 0.0  ;;  %v1229_v41 = vld [vmem:[%s3900_s4] sm:$0x3] }
 0x21f   : > { %vm1121_vm6 = vcmp.gt.f32.partialorder %v2757_v50, 0.0  ;;  %v1149_v54 = vmul.f32 0.01, %v2757_v50  ;;  %1823 = vmatpush1.bf16.msra.mxu1 %v3057_v45  ;;  %v1175_v62 = vsel %vm1119_vm4, %v2755_v42, %v1147_v49  ;;  %v3739_v42 = vrot.slane %v1229_v41, %v3673_v55 }
 0x220   : > { %vm1122_vm7 = vcmp.gt.f32.partialorder %v2758_v53, 0.0  ;;  %v1150_v60 = vmul.f32 0.01, %v2758_v53  ;;  %1824 = vmatprep.subr.bf16.mxu1 %v3062_v48  ;;  %v1176_v1 = vsel %vm1120_vm5, %v2756_v46, %v1148_v52  ;;  %2664 = vmatpush3.bf16.msra.mxu0 %v3714_v34  ;;  %v3742_v43 = vrot.slane %v1229_v41, %v3678_v57 }
 0x221   : > { %v1177_v63 = vsel %vm1121_vm6, %v2757_v50, %v1149_v54  ;;  %2665 = vmatprep.subr.bf16.mxu0 %v3716_v35 }
 0x222   : > { %v1090_v0 = vpop.f32.mrb[24].mxu0  ;;  %v1178_v2 = vsel %vm1122_vm7, %v2758_v53, %v1150_v60  ;;  %v1193_v3 = vpack.c.bf16 %v1177_v63, %v1175_v62 }
 0x223   : > { %v2759_v4 = vadd.f32 %v1090_v0, %v3681_v58  ;;  %v1092_v5 = vpop.f32.mrb[25].mxu0  ;;  %v1194_v6 = vpack.c.bf16 %v1178_v2, %v1176_v1  ;;  %1825 = vmatpush1.bf16.msra.mxu1 %v3060_v56 }
 0x224   : > { %v2760_v8 = vadd.f32 %v1092_v5, %v3684_v59  ;;  %v1094_v9 = vpop.f32.mrb[26].mxu0  ;;  %1826 = vmatprep.subr.bf16.mxu1 %v3065_v61  ;;  %2666 = vmatpush3.bf16.msra.mxu0 %v3719_v36 }
 0x225   : > { %v1151_v11 = vmul.f32 0.01, %v2759_v4  ;;  %v2761_v12 = vadd.f32 %v1094_v9, %v3681_v58  ;;  %v1096_v13 = vpop.f32.mrb[27].mxu0  ;;  %1483 = vmatprep.mubr.bf16.mxu1 %v1194_v6  ;;  %vm1123_vm8 = vcmp.gt.f32.partialorder %v2759_v4, 0.0  ;;  %2667 = vmatprep.subr.bf16.mxu0 %v3722_v37 }
 0x226   : > { %v1152_v14 = vmul.f32 0.01, %v2760_v8  ;;  %v2762_v15 = vadd.f32 %v1096_v13, %v3684_v59  ;;  %1484 = vmatmul.mubr.bf16.gmra.mrb[20].mxu1 %v1193_v3  ;;  %vm1124_vm9 = vcmp.gt.f32.partialorder %v2760_v8, 0.0  ;;  %v3074_v59 = vld [vmem:[#allocation8 + $0xd4] ss:$8 sps:$4 sm:$0xff]  }
 0x227   : > { %vm1125_vm10 = vcmp.gt.f32.partialorder %v2761_v12, 0.0  ;;  %v1153_v16 = vmul.f32 0.01, %v2761_v12  ;;  %1827 = vmatpush1.bf16.msra.mxu1 %v3063_v7  ;;  %v1179_v20 = vsel %vm1123_vm8, %v2759_v4, %v1151_v11 }
 0x228   : > { %vm1126_vm11 = vcmp.gt.f32.partialorder %v2762_v15, 0.0  ;;  %v1154_v18 = vmul.f32 0.01, %v2762_v15  ;;  %1828 = vmatprep.subr.bf16.mxu1 %v3068_v10  ;;  %v1180_v22 = vsel %vm1124_vm9, %v2760_v8, %v1152_v14  ;;  %2668 = vmatpush3.bf16.msra.mxu0 %v3725_v38 }
 0x229   : > { %v1181_v21 = vsel %vm1125_vm10, %v2761_v12, %v1153_v16  ;;  %2669 = vmatprep.subr.bf16.mxu0 %v3728_v39 }
 0x22a   : > { %v1182_v58 = vsel %vm1126_vm11, %v2762_v15, %v1154_v18  ;;  %v1195_v23 = vpack.c.bf16 %v1181_v21, %v1179_v20 }
 0x22b   : > { %v1196_v24 = vpack.c.bf16 %v1182_v58, %v1180_v22  ;;  %1829 = vmatpush1.bf16.msra.mxu1 %v3066_v17 }
 0x22c   : > { %1830 = vmatprep.subr.bf16.mxu1 %v3071_v19  ;;  %2670 = vmatpush3.bf16.msra.mxu0 %v3731_v40 }
 0x22d   : > { %1493 = vmatprep.mubr.bf16.mxu1 %v1196_v24 }
 0x22e   : > { %1494 = vmatmul.mubr.bf16.gmra.mrb[24].mxu1 %v1195_v23 }
 0x22f   : > { %1831 = vmatpush1.bf16.msra.mxu1 %v3069_v25 }
 0x230   : > { %1832 = vmatprep.subr.bf16.mxu1 %v3074_v59 }
 0x233   : > { %1833 = vmatpush1.bf16.msra.mxu1 %v3072_v26 }
 0x234   : > { %1834 = vmatprep.subr.bf16.mxu1 %v3077_v27 }
 0x237   : > { %1835 = vmatpush1.bf16.msra.mxu1 %v3075_v28 }
 0x238   : > { %1836 = vmatprep.subr.bf16.mxu1 %v3080_v29 }
 0x23b   : > { %1837 = vmatpush1.bf16.msra.mxu1 %v3078_v30 }
 0x23c   : > { %2719 = vmatprep.subr.bf16.mxu1 %v3081_v31 }
 0x2d1   : > { %v1435_v44 = vpop.f32.mrb[0].mxu1 }
 0x2d2   : > { %v1436_v45 = vadd.f32 %v1435_v44, %v3739_v42  ;;  %v1437_v46 = vpop.f32.mrb[1].mxu1 }
 0x2d3   : > { %v1438_v47 = vadd.f32 %v1437_v46, %v3742_v43  ;;  %v1439_v48 = vpop.f32.mrb[2].mxu1 }
 0x2d4   : > { %v1532_v49 = vmul.f32 0.01, %v1436_v45  ;;  %v1440_v50 = vadd.f32 %v1439_v48, %v3739_v42  ;;  %v1441_v51 = vpop.f32.mrb[3].mxu1  ;;  %vm1504_vm12 = vcmp.gt.f32.partialorder %v1436_v45, 0.0 }
 0x2d5   : > { %v1533_v52 = vmul.f32 0.01, %v1438_v47  ;;  %v1442_v53 = vadd.f32 %v1441_v51, %v3742_v43  ;;  %vm1505_vm13 = vcmp.gt.f32.partialorder %v1438_v47, 0.0 }
 0x2d6   : > { %vm1506_vm14 = vcmp.gt.f32.partialorder %v1440_v50, 0.0  ;;  %v1534_v54 = vmul.f32 0.01, %v1440_v50  ;;  %v1560_v60 = vsel %vm1504_vm12, %v1436_v45, %v1532_v49 }
 0x2d7   : > { %vm1507_vm15 = vcmp.gt.f32.partialorder %v1442_v53, 0.0  ;;  %v1535_v56 = vmul.f32 0.01, %v1442_v53  ;;  %v1561_v0 = vsel %vm1505_vm13, %v1438_v47, %v1533_v52 }
 0x2d8   : > { %v1562_v61 = vsel %vm1506_vm14, %v1440_v50, %v1534_v54 }
 0x2d9   : > { %v1588_v62 = vpack.c.bf16 %v1562_v61, %v1560_v60  ;;  %v1445_v63 = vpop.f32.mrb[4].mxu1  ;;  %v1563_v1 = vsel %vm1507_vm15, %v1442_v53, %v1535_v56 }
 0x2da   : > { %v1446_v2 = vadd.f32 %v1445_v63, %v3739_v42  ;;  %v1447_v3 = vpop.f32.mrb[5].mxu1  ;;  %v1589_v4 = vpack.c.bf16 %v1563_v1, %v1561_v0 }
 0x2db   : > { %v1448_v5 = vadd.f32 %v1447_v3, %v3742_v43  ;;  %v1449_v6 = vpop.f32.mrb[6].mxu1 }
 0x2dc   : > { %v1536_v7 = vmul.f32 0.01, %v1446_v2  ;;  %v1450_v8 = vadd.f32 %v1449_v6, %v3739_v42  ;;  %v1451_v9 = vpop.f32.mrb[7].mxu1  ;;  %1838 = vmatprep.mubr.bf16.mxu1 %v1589_v4  ;;  %vm1508_vm0 = vcmp.gt.f32.partialorder %v1446_v2, 0.0 }
 0x2dd   : > { %v1537_v10 = vmul.f32 0.01, %v1448_v5  ;;  %v1452_v11 = vadd.f32 %v1451_v9, %v3742_v43  ;;  %1839 = vmatmul.mubr.bf16.vlgmr.msra.gmra.mrb[28].mxu1 %v1588_v62  ;;  %vm1509_vm1 = vcmp.gt.f32.partialorder %v1448_v5, 0.0 }
 0x2de   : > { %vm1510_vm2 = vcmp.gt.f32.partialorder %v1450_v8, 0.0  ;;  %v1538_v12 = vmul.f32 0.01, %v1450_v8  ;;  %2727 = vmatpush3.bf16.msra.mxu1 %v3082_v32  ;;  %v1564_v14 = vsel %vm1508_vm0, %v1446_v2, %v1536_v7 }
 0x2df   : > { %vm1511_vm3 = vcmp.gt.f32.partialorder %v1452_v11, 0.0  ;;  %v1539_v13 = vmul.f32 0.01, %v1452_v11  ;;  %2720 = vmatprep.subr.bf16.mxu1 %v3083_v33  ;;  %v1565_v17 = vsel %vm1509_vm1, %v1448_v5, %v1537_v10 }
 0x2e0   : > { %v1566_v15 = vsel %vm1510_vm2, %v1450_v8, %v1538_v12 }
 0x2e1   : > { %v1455_v16 = vpop.f32.mrb[8].mxu1  ;;  %v1567_v18 = vsel %vm1511_vm3, %v1452_v11, %v1539_v13  ;;  %v1590_v19 = vpack.c.bf16 %v1566_v15, %v1564_v14 }
 0x2e2   : > { %v1456_v20 = vadd.f32 %v1455_v16, %v3739_v42  ;;  %v1457_v21 = vpop.f32.mrb[9].mxu1  ;;  %v1591_v22 = vpack.c.bf16 %v1567_v18, %v1565_v17  ;;  %2728 = vmatpush3.bf16.msra.mxu1 %v3714_v34 }
 0x2e3   : > { %v1458_v58 = vadd.f32 %v1457_v21, %v3742_v43  ;;  %v1459_v23 = vpop.f32.mrb[10].mxu1  ;;  %2721 = vmatprep.subr.bf16.mxu1 %v3716_v35 }
 0x2e4   : > { %v1540_v24 = vmul.f32 0.01, %v1456_v20  ;;  %v1460_v25 = vadd.f32 %v1459_v23, %v3739_v42  ;;  %v1461_v59 = vpop.f32.mrb[11].mxu1  ;;  %1848 = vmatprep.mubr.bf16.mxu1 %v1591_v22  ;;  %vm1512_vm4 = vcmp.gt.f32.partialorder %v1456_v20, 0.0 }
 0x2e5   : > { %v1541_v26 = vmul.f32 0.01, %v1458_v58  ;;  %v1462_v27 = vadd.f32 %v1461_v59, %v3742_v43  ;;  %1849 = vmatmul.mubr.bf16.gmra.mrb[32].mxu1 %v1590_v19  ;;  %vm1513_vm5 = vcmp.gt.f32.partialorder %v1458_v58, 0.0 }
 0x2e6   : > { %vm1514_vm6 = vcmp.gt.f32.partialorder %v1460_v25, 0.0  ;;  %v1542_v28 = vmul.f32 0.01, %v1460_v25  ;;  %2729 = vmatpush3.bf16.msra.mxu1 %v3719_v36  ;;  %v1568_v30 = vsel %vm1512_vm4, %v1456_v20, %v1540_v24 }
 0x2e7   : > { %vm1515_vm7 = vcmp.gt.f32.partialorder %v1462_v27, 0.0  ;;  %v1543_v29 = vmul.f32 0.01, %v1462_v27  ;;  %2722 = vmatprep.subr.bf16.mxu1 %v3722_v37  ;;  %v1569_v33 = vsel %vm1513_vm5, %v1458_v58, %v1541_v26 }
 0x2e8   : > { %v1570_v31 = vsel %vm1514_vm6, %v1460_v25, %v1542_v28 }
 0x2e9   : > { %v1465_v32 = vpop.f32.mrb[12].mxu1  ;;  %v1571_v34 = vsel %vm1515_vm7, %v1462_v27, %v1543_v29  ;;  %v1592_v35 = vpack.c.bf16 %v1570_v31, %v1568_v30 }
 0x2ea   : > { %v1466_v41 = vadd.f32 %v1465_v32, %v3739_v42  ;;  %v1467_v44 = vpop.f32.mrb[13].mxu1  ;;  %v1593_v45 = vpack.c.bf16 %v1571_v34, %v1569_v33  ;;  %2730 = vmatpush3.bf16.msra.mxu1 %v3725_v38 }
 0x2eb   : > { %v1468_v46 = vadd.f32 %v1467_v44, %v3742_v43  ;;  %v1469_v47 = vpop.f32.mrb[14].mxu1  ;;  %2723 = vmatprep.subr.bf16.mxu1 %v3728_v39 }
 0x2ec   : > { %v1544_v36 = vmul.f32 0.01, %v1466_v41  ;;  %v1470_v37 = vadd.f32 %v1469_v47, %v3739_v42  ;;  %v1471_v48 = vpop.f32.mrb[15].mxu1  ;;  %1858 = vmatprep.mubr.bf16.mxu1 %v1593_v45  ;;  %vm1516_vm8 = vcmp.gt.f32.partialorder %v1466_v41, 0.0 }
 0x2ed   : > { %v1545_v49 = vmul.f32 0.01, %v1468_v46  ;;  %v1472_v50 = vadd.f32 %v1471_v48, %v3742_v43  ;;  %1859 = vmatmul.mubr.bf16.gmra.mrb[36].mxu1 %v1592_v35  ;;  %vm1517_vm9 = vcmp.gt.f32.partialorder %v1468_v46, 0.0 }
 0x2ee   : > { %vm1518_vm10 = vcmp.gt.f32.partialorder %v1470_v37, 0.0  ;;  %v1546_v51 = vmul.f32 0.01, %v1470_v37  ;;  %2731 = vmatpush3.bf16.msra.mxu1 %v3731_v40  ;;  %v1572_v52 = vsel %vm1516_vm8, %v1466_v41, %v1544_v36 }
 0x2ef   : > { %vm1519_vm11 = vcmp.gt.f32.partialorder %v1472_v50, 0.0  ;;  %v1547_v38 = vmul.f32 0.01, %v1472_v50  ;;  %v1573_v54 = vsel %vm1517_vm9, %v1468_v46, %v1545_v49 }
 0x2f0   : > { %v1574_v53 = vsel %vm1518_vm10, %v1470_v37, %v1546_v51 }
 0x2f1   : > { %v1475_v39 = vpop.f32.mrb[16].mxu1  ;;  %v1575_v56 = vsel %vm1519_vm11, %v1472_v50, %v1547_v38  ;;  %v1594_v60 = vpack.c.bf16 %v1574_v53, %v1572_v52  ;;  %v3092_v52 = vld [vmem:[#allocation10 + $0x28] sm:$0xff]   ;;  %v3094_v53 = vld [vmem:[#allocation10 + $0x30] sm:$0xff]  }
 0x2f2   : > { %v1476_v61 = vadd.f32 %v1475_v39, %v3739_v42  ;;  %v1477_v62 = vpop.f32.mrb[17].mxu1  ;;  %v1595_v63 = vpack.c.bf16 %v1575_v56, %v1573_v54  ;;  %v3095_v39 = vld [vmem:[#allocation10 + $0x78] sm:$0xff]   ;;  %v1634_v56 = vld [vmem:[%s3902_s6] sm:$0x3] }
 0x2f3   : > { %v1478_v0 = vadd.f32 %v1477_v62, %v3742_v43  ;;  %v1479_v1 = vpop.f32.mrb[18].mxu1  ;;  %v3096_v54 = vld [vmem:[#allocation10 + $0x38] sm:$0xff]  }
 0x2f4   : > { %v1548_v2 = vmul.f32 0.01, %v1476_v61  ;;  %v1480_v3 = vadd.f32 %v1479_v1, %v3739_v42  ;;  %v1481_v4 = vpop.f32.mrb[19].mxu1  ;;  %1868 = vmatprep.mubr.bf16.mxu1 %v1595_v63  ;;  %vm1520_vm12 = vcmp.gt.f32.partialorder %v1476_v61, 0.0 }
 0x2f5   : > { %v1549_v40 = vmul.f32 0.01, %v1478_v0  ;;  %v1482_v5 = vadd.f32 %v1481_v4, %v3742_v43  ;;  %1869 = vmatmul.mubr.bf16.gmra.mrb[40].mxu1 %v1594_v60  ;;  %vm1521_vm13 = vcmp.gt.f32.partialorder %v1478_v0, 0.0  ;;  %v3783_v60 = vrot.slane %v1634_v56, %v3673_v55 }
 0x2f6   : > { %vm1522_vm14 = vcmp.gt.f32.partialorder %v1480_v3, 0.0  ;;  %v1550_v6 = vmul.f32 0.01, %v1480_v3  ;;  %v1576_v8 = vsel %vm1520_vm12, %v1476_v61, %v1548_v2  ;;  %v3786_v61 = vrot.slane %v1634_v56, %v3678_v57 }
 0x2f7   : > { %vm1523_vm15 = vcmp.gt.f32.partialorder %v1482_v5, 0.0  ;;  %v1551_v7 = vmul.f32 0.01, %v1482_v5  ;;  %v1577_v11 = vsel %vm1521_vm13, %v1478_v0, %v1549_v40 }
 0x2f8   : > { %v1578_v9 = vsel %vm1522_vm14, %v1480_v3, %v1550_v6 }
 0x2f9   : > { %v1485_v10 = vpop.f32.mrb[20].mxu1  ;;  %v1579_v12 = vsel %vm1523_vm15, %v1482_v5, %v1551_v7  ;;  %v1596_v13 = vpack.c.bf16 %v1578_v9, %v1576_v8 }
 0x2fa   : > { %v1486_v14 = vadd.f32 %v1485_v10, %v3739_v42  ;;  %v1487_v15 = vpop.f32.mrb[21].mxu1  ;;  %v1597_v16 = vpack.c.bf16 %v1579_v12, %v1577_v11 }
 0x2fb   : > { %v1488_v17 = vadd.f32 %v1487_v15, %v3742_v43  ;;  %v1489_v18 = vpop.f32.mrb[22].mxu1 }
 0x2fc   : > { %v1552_v19 = vmul.f32 0.01, %v1486_v14  ;;  %v1490_v20 = vadd.f32 %v1489_v18, %v3739_v42  ;;  %v1491_v21 = vpop.f32.mrb[23].mxu1  ;;  %1878 = vmatprep.mubr.bf16.mxu1 %v1597_v16  ;;  %vm1524_vm0 = vcmp.gt.f32.partialorder %v1486_v14, 0.0 }
 0x2fd   : > { %v1553_v22 = vmul.f32 0.01, %v1488_v17  ;;  %v1492_v58 = vadd.f32 %v1491_v21, %v3742_v43  ;;  %1879 = vmatmul.mubr.bf16.gmra.mrb[44].mxu1 %v1596_v13  ;;  %vm1525_vm1 = vcmp.gt.f32.partialorder %v1488_v17, 0.0 }
 0x2fe   : > { %vm1526_vm2 = vcmp.gt.f32.partialorder %v1490_v20, 0.0  ;;  %v1554_v23 = vmul.f32 0.01, %v1490_v20  ;;  %v1580_v25 = vsel %vm1524_vm0, %v1486_v14, %v1552_v19 }
 0x2ff   : > { %vm1527_vm3 = vcmp.gt.f32.partialorder %v1492_v58, 0.0  ;;  %v1555_v24 = vmul.f32 0.01, %v1492_v58  ;;  %v1581_v27 = vsel %vm1525_vm1, %v1488_v17, %v1553_v22 }
 0x300   : > { %v1582_v59 = vsel %vm1526_vm2, %v1490_v20, %v1554_v23 }
 0x301   : > { %v1495_v26 = vpop.f32.mrb[24].mxu1  ;;  %v1583_v28 = vsel %vm1527_vm3, %v1492_v58, %v1555_v24  ;;  %v1598_v29 = vpack.c.bf16 %v1582_v59, %v1580_v25 }
 0x302   : > { %v1496_v30 = vadd.f32 %v1495_v26, %v3739_v42  ;;  %v1497_v31 = vpop.f32.mrb[25].mxu1  ;;  %v1599_v32 = vpack.c.bf16 %v1583_v28, %v1581_v27 }
 0x303   : > { %v1498_v33 = vadd.f32 %v1497_v31, %v3742_v43  ;;  %v1499_v34 = vpop.f32.mrb[26].mxu1 }
 0x304   : > { %v1556_v35 = vmul.f32 0.01, %v1496_v30  ;;  %v1500_v41 = vadd.f32 %v1499_v34, %v3739_v42  ;;  %v1501_v44 = vpop.f32.mrb[27].mxu1  ;;  %1888 = vmatprep.mubr.bf16.mxu1 %v1599_v32  ;;  %vm1528_vm4 = vcmp.gt.f32.partialorder %v1496_v30, 0.0  ;;  %v3091_v42 = vld [vmem:[#allocation10 + $0x68] sm:$0xff]  }
 0x305   : > { %v1557_v45 = vmul.f32 0.01, %v1498_v33  ;;  %v1502_v46 = vadd.f32 %v1501_v44, %v3742_v43  ;;  %1889 = vmatmul.mubr.bf16.gmra.mrb[48].mxu1 %v1598_v29  ;;  %vm1529_vm5 = vcmp.gt.f32.partialorder %v1498_v33, 0.0  ;;  %2671 = vmatprep.subr.bf16.mxu0 %v3091_v42  ;;  %v3093_v43 = vld [vmem:[#allocation10 + $0x70] sm:$0xff]  }
 0x306   : > { %vm1530_vm6 = vcmp.gt.f32.partialorder %v1500_v41, 0.0  ;;  %v1558_v47 = vmul.f32 0.01, %v1500_v41  ;;  %v1584_v37 = vsel %vm1528_vm4, %v1496_v30, %v1556_v35  ;;  %2724 = vmatprep.subr.bf16.mxu1 %v3091_v42  ;;  %2672 = vmatpush3.bf16.msra.mxu0 %v3092_v52 }
 0x307   : > { %vm1531_vm7 = vcmp.gt.f32.partialorder %v1502_v46, 0.0  ;;  %v1559_v36 = vmul.f32 0.01, %v1502_v46  ;;  %v1585_v49 = vsel %vm1529_vm5, %v1498_v33, %v1557_v45  ;;  %2732 = vmatpush3.bf16.msra.mxu1 %v3092_v52  ;;  %2673 = vmatprep.subr.bf16.mxu0 %v3093_v43 }
 0x308   : > { %v1586_v48 = vsel %vm1530_vm6, %v1500_v41, %v1558_v47  ;;  %2725 = vmatprep.subr.bf16.mxu1 %v3093_v43 }
 0x309   : > { %v1587_v50 = vsel %vm1531_vm7, %v1502_v46, %v1559_v36  ;;  %v1600_v51 = vpack.c.bf16 %v1586_v48, %v1584_v37 }
 0x30a   : > { %v1601_v38 = vpack.c.bf16 %v1587_v50, %v1585_v49  ;;  %2674 = vmatpush3.bf16.msra.mxu0 %v3094_v53 }
 0x30b   : > { %2733 = vmatpush3.bf16.msra.mxu1 %v3094_v53  ;;  %2675 = vmatprep.subr.bf16.mxu0 %v3095_v39 }
 0x30c   : > { %1898 = vmatprep.mubr.bf16.mxu1 %v1601_v38  ;;  %2726 = vmatprep.subr.bf16.mxu1 %v3095_v39 }
 0x30d   : > { %1899 = vmatmul.mubr.bf16.gmra.mrb[52].mxu1 %v1600_v51 }
 0x30e   : > { %2676 = vmatpush3.bf16.msra.mxu0 %v3096_v54 }
 0x30f   : > { %2734 = vmatpush3.bf16.msra.mxu1 %v3096_v54 }
 0x3b0   : > { %v1840_v62 = vpop.f32.mrb[28].mxu1 }
 0x3b1   : > { %v1841_v63 = vadd.f32 %v1840_v62, %v3783_v60  ;;  %v1842_v0 = vpop.f32.mrb[29].mxu1 }
 0x3b2   : > { %v1843_v1 = vadd.f32 %v1842_v0, %v3786_v61  ;;  %v1844_v2 = vpop.f32.mrb[30].mxu1 }
 0x3b3   : > { %v1937_v3 = vmul.f32 0.01, %v1841_v63  ;;  %v1845_v4 = vadd.f32 %v1844_v2, %v3783_v60  ;;  %v1846_v40 = vpop.f32.mrb[31].mxu1  ;;  %vm1909_vm8 = vcmp.gt.f32.partialorder %v1841_v63, 0.0 }
 0x3b4   : > { %v1938_v5 = vmul.f32 0.01, %v1843_v1  ;;  %v1847_v6 = vadd.f32 %v1846_v40, %v3786_v61  ;;  %vm1910_vm9 = vcmp.gt.f32.partialorder %v1843_v1, 0.0 }
 0x3b5   : > { %vm1911_vm10 = vcmp.gt.f32.partialorder %v1845_v4, 0.0  ;;  %v1939_v55 = vmul.f32 0.01, %v1845_v4  ;;  %v1965_v7 = vsel %vm1909_vm8, %v1841_v63, %v1937_v3 }
 0x3b6   : > { %vm1912_vm11 = vcmp.gt.f32.partialorder %v1847_v6, 0.0  ;;  %v1940_v57 = vmul.f32 0.01, %v1847_v6  ;;  %v1966_v11 = vsel %vm1910_vm9, %v1843_v1, %v1938_v5 }
 0x3b7   : > { %v1967_v8 = vsel %vm1911_vm10, %v1845_v4, %v1939_v55 }
 0x3b8   : > { %v1993_v9 = vpack.c.bf16 %v1967_v8, %v1965_v7  ;;  %v1850_v10 = vpop.f32.mrb[32].mxu1  ;;  %v1968_v12 = vsel %vm1912_vm11, %v1847_v6, %v1940_v57 }
 0x3b9   : > { %v1851_v13 = vadd.f32 %v1850_v10, %v3783_v60  ;;  %v1852_v14 = vpop.f32.mrb[33].mxu1  ;;  %v1994_v15 = vpack.c.bf16 %v1968_v12, %v1966_v11 }
 0x3ba   : > { %v1853_v16 = vadd.f32 %v1852_v14, %v3786_v61  ;;  %v1854_v17 = vpop.f32.mrb[34].mxu1 }
 0x3bb   : > { %v1941_v18 = vmul.f32 0.01, %v1851_v13  ;;  %v1855_v19 = vadd.f32 %v1854_v17, %v3783_v60  ;;  %v1856_v20 = vpop.f32.mrb[35].mxu1  ;;  %2174 = vmatprep.mubr.bf16.mxu0 %v1994_v15  ;;  %vm1913_vm12 = vcmp.gt.f32.partialorder %v1851_v13, 0.0 }
 0x3bc   : > { %v1942_v21 = vmul.f32 0.01, %v1853_v16  ;;  %v1857_v22 = vadd.f32 %v1856_v20, %v3786_v61  ;;  %2175 = vmatmul.mubr.bf16.vlgmr.msra.gmra.mrb[28].mxu0 %v1993_v9  ;;  %vm1914_vm13 = vcmp.gt.f32.partialorder %v1853_v16, 0.0 }
 0x3bd   : > { %vm1915_vm14 = vcmp.gt.f32.partialorder %v1855_v19, 0.0  ;;  %v1943_v58 = vmul.f32 0.01, %v1855_v19  ;;  %v1969_v24 = vsel %vm1913_vm12, %v1851_v13, %v1941_v18 }
 0x3be   : > { %vm1916_vm15 = vcmp.gt.f32.partialorder %v1857_v22, 0.0  ;;  %v1944_v23 = vmul.f32 0.01, %v1857_v22  ;;  %v1970_v26 = vsel %vm1914_vm13, %v1853_v16, %v1942_v21 }
 0x3bf   : > { %v1971_v25 = vsel %vm1915_vm14, %v1855_v19, %v1943_v58 }
 0x3c0   : > { %v1860_v59 = vpop.f32.mrb[36].mxu1  ;;  %v1972_v27 = vsel %vm1916_vm15, %v1857_v22, %v1944_v23  ;;  %v1995_v28 = vpack.c.bf16 %v1971_v25, %v1969_v24 }
 0x3c1   : > { %v1861_v29 = vadd.f32 %v1860_v59, %v3783_v60  ;;  %v1862_v30 = vpop.f32.mrb[37].mxu1  ;;  %v1996_v31 = vpack.c.bf16 %v1972_v27, %v1970_v26 }
 0x3c2   : > { %v1863_v32 = vadd.f32 %v1862_v30, %v3786_v61  ;;  %v1864_v33 = vpop.f32.mrb[38].mxu1 }
 0x3c3   : > { %v1945_v34 = vmul.f32 0.01, %v1861_v29  ;;  %v1865_v35 = vadd.f32 %v1864_v33, %v3783_v60  ;;  %v1866_v41 = vpop.f32.mrb[39].mxu1  ;;  %2182 = vmatprep.mubr.bf16.mxu0 %v1996_v31  ;;  %vm1917_vm0 = vcmp.gt.f32.partialorder %v1861_v29, 0.0 }
 0x3c4   : > { %v1946_v44 = vmul.f32 0.01, %v1863_v32  ;;  %v1867_v45 = vadd.f32 %v1866_v41, %v3786_v61  ;;  %2183 = vmatmul.mubr.bf16.gmra.mrb[32].mxu0 %v1995_v28  ;;  %vm1918_vm1 = vcmp.gt.f32.partialorder %v1863_v32, 0.0 }
 0x3c5   : > { %vm1919_vm2 = vcmp.gt.f32.partialorder %v1865_v35, 0.0  ;;  %v1947_v46 = vmul.f32 0.01, %v1865_v35  ;;  %v1973_v36 = vsel %vm1917_vm0, %v1861_v29, %v1945_v34 }
 0x3c6   : > { %vm1920_vm3 = vcmp.gt.f32.partialorder %v1867_v45, 0.0  ;;  %v1948_v47 = vmul.f32 0.01, %v1867_v45  ;;  %v1974_v49 = vsel %vm1918_vm1, %v1863_v32, %v1946_v44 }
 0x3c7   : > { %v1975_v37 = vsel %vm1919_vm2, %v1865_v35, %v1947_v46 }
 0x3c8   : > { %v1870_v48 = vpop.f32.mrb[40].mxu1  ;;  %v1976_v50 = vsel %vm1920_vm3, %v1867_v45, %v1948_v47  ;;  %v1997_v51 = vpack.c.bf16 %v1975_v37, %v1973_v36 }
 0x3c9   : > { %v1871_v38 = vadd.f32 %v1870_v48, %v3783_v60  ;;  %v1872_v42 = vpop.f32.mrb[41].mxu1  ;;  %v1998_v52 = vpack.c.bf16 %v1976_v50, %v1974_v49 }
 0x3ca   : > { %v1873_v43 = vadd.f32 %v1872_v42, %v3786_v61  ;;  %v1874_v53 = vpop.f32.mrb[42].mxu1 }
 0x3cb   : > { %v1949_v39 = vmul.f32 0.01, %v1871_v38  ;;  %v1875_v54 = vadd.f32 %v1874_v53, %v3783_v60  ;;  %v1876_v56 = vpop.f32.mrb[43].mxu1  ;;  %2190 = vmatprep.mubr.bf16.mxu0 %v1998_v52  ;;  %vm1921_vm4 = vcmp.gt.f32.partialorder %v1871_v38, 0.0 }
 0x3cc   : > { %v1950_v62 = vmul.f32 0.01, %v1873_v43  ;;  %v1877_v63 = vadd.f32 %v1876_v56, %v3786_v61  ;;  %2191 = vmatmul.mubr.bf16.gmra.mrb[36].mxu0 %v1997_v51  ;;  %vm1922_vm5 = vcmp.gt.f32.partialorder %v1873_v43, 0.0 }
 0x3cd   : > { %vm1923_vm6 = vcmp.gt.f32.partialorder %v1875_v54, 0.0  ;;  %v1951_v0 = vmul.f32 0.01, %v1875_v54  ;;  %v1977_v2 = vsel %vm1921_vm4, %v1871_v38, %v1949_v39 }
 0x3ce   : > { %vm1924_vm7 = vcmp.gt.f32.partialorder %v1877_v63, 0.0  ;;  %v1952_v1 = vmul.f32 0.01, %v1877_v63  ;;  %v1978_v40 = vsel %vm1922_vm5, %v1873_v43, %v1950_v62 }
 0x3cf   : > { %v1979_v3 = vsel %vm1923_vm6, %v1875_v54, %v1951_v0 }
 0x3d0   : > { %v1880_v4 = vpop.f32.mrb[44].mxu1  ;;  %v1980_v5 = vsel %vm1924_vm7, %v1877_v63, %v1952_v1  ;;  %v1999_v6 = vpack.c.bf16 %v1979_v3, %v1977_v2 }
 0x3d1   : > { %v1881_v55 = vadd.f32 %v1880_v4, %v3783_v60  ;;  %v1882_v57 = vpop.f32.mrb[45].mxu1  ;;  %v2000_v7 = vpack.c.bf16 %v1980_v5, %v1978_v40 }
 0x3d2   : > { %v1883_v8 = vadd.f32 %v1882_v57, %v3786_v61  ;;  %v1884_v9 = vpop.f32.mrb[46].mxu1 }
 0x3d3   : > { %v1953_v10 = vmul.f32 0.01, %v1881_v55  ;;  %v1885_v11 = vadd.f32 %v1884_v9, %v3783_v60  ;;  %v1886_v12 = vpop.f32.mrb[47].mxu1  ;;  %2198 = vmatprep.mubr.bf16.mxu0 %v2000_v7  ;;  %vm1925_vm8 = vcmp.gt.f32.partialorder %v1881_v55, 0.0 }
 0x3d4   : > { %v1954_v13 = vmul.f32 0.01, %v1883_v8  ;;  %v1887_v14 = vadd.f32 %v1886_v12, %v3786_v61  ;;  %2199 = vmatmul.mubr.bf16.gmra.mrb[40].mxu0 %v1999_v6  ;;  %vm1926_vm9 = vcmp.gt.f32.partialorder %v1883_v8, 0.0 }
 0x3d5   : > { %vm1927_vm10 = vcmp.gt.f32.partialorder %v1885_v11, 0.0  ;;  %v1955_v15 = vmul.f32 0.01, %v1885_v11  ;;  %v1981_v17 = vsel %vm1925_vm8, %v1881_v55, %v1953_v10 }
 0x3d6   : > { %vm1928_vm11 = vcmp.gt.f32.partialorder %v1887_v14, 0.0  ;;  %v1956_v16 = vmul.f32 0.01, %v1887_v14  ;;  %v1982_v21 = vsel %vm1926_vm9, %v1883_v8, %v1954_v13 }
 0x3d7   : > { %v1983_v18 = vsel %vm1927_vm10, %v1885_v11, %v1955_v15 }
 0x3d8   : > { %v2001_v19 = vpack.c.bf16 %v1983_v18, %v1981_v17  ;;  %v1890_v20 = vpop.f32.mrb[48].mxu1  ;;  %v1984_v22 = vsel %vm1928_vm11, %v1887_v14, %v1956_v16 }
 0x3d9   : > { %v1891_v58 = vadd.f32 %v1890_v20, %v3783_v60  ;;  %v1892_v23 = vpop.f32.mrb[49].mxu1  ;;  %v2002_v24 = vpack.c.bf16 %v1984_v22, %v1982_v21 }
 0x3da   : > { %v1893_v25 = vadd.f32 %v1892_v23, %v3786_v61  ;;  %v1894_v59 = vpop.f32.mrb[50].mxu1 }
 0x3db   : > { %v1957_v26 = vmul.f32 0.01, %v1891_v58  ;;  %v1895_v27 = vadd.f32 %v1894_v59, %v3783_v60  ;;  %v1896_v28 = vpop.f32.mrb[51].mxu1  ;;  %2206 = vmatprep.mubr.bf16.mxu1 %v2002_v24  ;;  %vm1929_vm12 = vcmp.gt.f32.partialorder %v1891_v58, 0.0 }
 0x3dc   : > { %v1958_v29 = vmul.f32 0.01, %v1893_v25  ;;  %v1897_v30 = vadd.f32 %v1896_v28, %v3786_v61  ;;  %2207 = vmatmul.mubr.bf16.vlgmr.msra.gmra.mrb[56].mxu1 %v2001_v19  ;;  %vm1930_vm13 = vcmp.gt.f32.partialorder %v1893_v25, 0.0 }
 0x3dd   : > { %vm1931_vm14 = vcmp.gt.f32.partialorder %v1895_v27, 0.0  ;;  %v1959_v31 = vmul.f32 0.01, %v1895_v27  ;;  %v1985_v33 = vsel %vm1929_vm12, %v1891_v58, %v1957_v26 }
 0x3de   : > { %vm1932_vm15 = vcmp.gt.f32.partialorder %v1897_v30, 0.0  ;;  %v1960_v32 = vmul.f32 0.01, %v1897_v30  ;;  %v1986_v41 = vsel %vm1930_vm13, %v1893_v25, %v1958_v29 }
 0x3df   : > { %v1987_v34 = vsel %vm1931_vm14, %v1895_v27, %v1959_v31 }
 0x3e0   : > { %v1900_v35 = vpop.f32.mrb[52].mxu1  ;;  %v1988_v44 = vsel %vm1932_vm15, %v1897_v30, %v1960_v32  ;;  %v2003_v45 = vpack.c.bf16 %v1987_v34, %v1985_v33 }
 0x3e1   : > { %v1901_v46 = vadd.f32 %v1900_v35, %v3783_v60  ;;  %v1902_v47 = vpop.f32.mrb[53].mxu1  ;;  %v2004_v36 = vpack.c.bf16 %v1988_v44, %v1986_v41 }
 0x3e2   : > { %v1903_v37 = vadd.f32 %v1902_v47, %v3786_v61  ;;  %v1904_v48 = vpop.f32.mrb[54].mxu1 }
 0x3e3   : > { %v1961_v49 = vmul.f32 0.01, %v1901_v46  ;;  %v1905_v50 = vadd.f32 %v1904_v48, %v3783_v60  ;;  %v1906_v51 = vpop.f32.mrb[55].mxu1  ;;  %2214 = vmatprep.mubr.bf16.mxu1 %v2004_v36  ;;  %vm1933_vm0 = vcmp.gt.f32.partialorder %v1901_v46, 0.0 }
 0x3e4   : > { %v1962_v38 = vmul.f32 0.01, %v1903_v37  ;;  %v1907_v42 = vadd.f32 %v1906_v51, %v3786_v61  ;;  %2215 = vmatmul.mubr.bf16.gmra.mrb[60].mxu1 %v2003_v45  ;;  %vm1934_vm1 = vcmp.gt.f32.partialorder %v1903_v37, 0.0  ;;  %v3819_v61 = vld [vmem:[%s3904_s8] ss:$0 sm:$0xff] }
 0x3e5   : > { %vm1935_vm2 = vcmp.gt.f32.partialorder %v1905_v50, 0.0  ;;  %v1963_v52 = vmul.f32 0.01, %v1905_v50  ;;  %v1989_v53 = vsel %vm1933_vm0, %v1901_v46, %v1961_v49 }
 0x3e6   : > { %vm1936_vm3 = vcmp.gt.f32.partialorder %v1907_v42, 0.0  ;;  %v1964_v43 = vmul.f32 0.01, %v1907_v42  ;;  %v1990_v54 = vsel %vm1934_vm1, %v1903_v37, %v1962_v38 }
 0x3e7   : > { %v1991_v39 = vsel %vm1935_vm2, %v1905_v50, %v1963_v52 }
 0x3e8   : > { %v1992_v56 = vsel %vm1936_vm3, %v1907_v42, %v1964_v43  ;;  %v2005_v62 = vpack.c.bf16 %v1991_v39, %v1989_v53 }
 0x3e9   : > { %v2006_v63 = vpack.c.bf16 %v1992_v56, %v1990_v54 }
 0x3eb   : > { %2222 = vmatprep.mubr.bf16.mxu1 %v2006_v63 }
 0x3ec   : > { %2223 = vmatmul.mubr.bf16.gmra.mrb[64].mxu1 %v2005_v62 }
 0x48f   : > { %v2677_v60 = vpop.f32.mrb[28].mxu0 }
 0x490   : > { %v2678_v0 = vpop.f32.mrb[29].mxu0 }
 0x491   : > { %v2679_v1 = vadd.f32 %v2678_v0, %v2677_v60  ;;  %v2680_v2 = vpop.f32.mrb[30].mxu0 }
 0x492   : > { %v2681_v3 = vpop.f32.mrb[31].mxu0 }
 0x493   : > { %v2682_v4 = vadd.f32 %v2681_v3, %v2680_v2  ;;  %v2177_v40 = vadd.f32 %v2679_v1, %v3819_v61 }
 0x495   : > { %v2180_v5 = vadd.f32 %v2682_v4, %v3819_v61 }
 0x497   : > { %v2622_v6 = vpack.c.bf16 %v2180_v5, %v2177_v40  ;;  %v2683_v55 = vpop.f32.mrb[32].mxu0 }
 0x498   : > { %v2684_v57 = vpop.f32.mrb[33].mxu0 }
 0x499   : > { %2623 = vst [vmem:[%s3824_s22] sm:$0xff] %v2622_v6   ;;  %v2685_v7 = vadd.f32 %v2684_v57, %v2683_v55  ;;  %v2686_v8 = vpop.f32.mrb[34].mxu0 }
 0x49a   : > { %v2687_v9 = vpop.f32.mrb[35].mxu0 }
 0x49b   : > { %v2688_v10 = vadd.f32 %v2687_v9, %v2686_v8  ;;  %v2185_v11 = vadd.f32 %v2685_v7, %v3819_v61 }
 0x49d   : > { %v2188_v12 = vadd.f32 %v2688_v10, %v3819_v61 }
 0x49f   : > { %v2627_v13 = vpack.c.bf16 %v2188_v12, %v2185_v11  ;;  %v2689_v14 = vpop.f32.mrb[36].mxu0 }
 0x4a0   : > { %v2690_v15 = vpop.f32.mrb[37].mxu0 }
 0x4a1   : > { %2655 = vst [vmem:[%s3824_s22 + $0x8] sm:$0xff] %v2627_v13   ;;  %v2691_v16 = vadd.f32 %v2690_v15, %v2689_v14  ;;  %v2692_v17 = vpop.f32.mrb[38].mxu0 }
 0x4a2   : > { %v2693_v18 = vpop.f32.mrb[39].mxu0 }
 0x4a3   : > { %v2694_v19 = vadd.f32 %v2693_v18, %v2692_v17  ;;  %v2193_v20 = vadd.f32 %v2691_v16, %v3819_v61 }
 0x4a5   : > { %v2196_v21 = vadd.f32 %v2694_v19, %v3819_v61 }
 0x4a7   : > { %v2632_v22 = vpack.c.bf16 %v2196_v21, %v2193_v20  ;;  %v2695_v58 = vpop.f32.mrb[40].mxu0 }
 0x4a8   : > { %v2696_v23 = vpop.f32.mrb[41].mxu0 }
 0x4a9   : > { %2656 = vst [vmem:[%s3824_s22 + $0x10] sm:$0xff] %v2632_v22   ;;  %v2697_v24 = vadd.f32 %v2696_v23, %v2695_v58  ;;  %v2698_v25 = vpop.f32.mrb[42].mxu0 }
 0x4aa   : > { %v2699_v59 = vpop.f32.mrb[43].mxu0 }
 0x4ab   : > { %v2700_v26 = vadd.f32 %v2699_v59, %v2698_v25  ;;  %v2201_v27 = vadd.f32 %v2697_v24, %v3819_v61 }
 0x4ad   : > { %v2204_v28 = vadd.f32 %v2700_v26, %v3819_v61 }
 0x4af   : > { %v2637_v29 = vpack.c.bf16 %v2204_v28, %v2201_v27  ;;  %v2701_v30 = vpop.f32.mrb[56].mxu1 }
 0x4b0   : > { %v2702_v31 = vpop.f32.mrb[57].mxu1 }
 0x4b1   : > { %2657 = vst [vmem:[%s3824_s22 + $0x18] sm:$0xff] %v2637_v29   ;;  %v2703_v32 = vadd.f32 %v2702_v31, %v2701_v30  ;;  %v2704_v33 = vpop.f32.mrb[58].mxu1 }
 0x4b2   : > { %v2705_v34 = vpop.f32.mrb[59].mxu1 }
 0x4b3   : > { %v2706_v35 = vadd.f32 %v2705_v34, %v2704_v33  ;;  %v2209_v41 = vadd.f32 %v2703_v32, %v3819_v61 }
 0x4b5   : > { %v2212_v44 = vadd.f32 %v2706_v35, %v3819_v61 }
 0x4b7   : > { %v2642_v45 = vpack.c.bf16 %v2212_v44, %v2209_v41  ;;  %v2707_v46 = vpop.f32.mrb[60].mxu1 }
 0x4b8   : > { %v2708_v47 = vpop.f32.mrb[61].mxu1 }
 0x4b9   : > { %2658 = vst [vmem:[%s3824_s22 + $0x20] sm:$0xff] %v2642_v45   ;;  %v2709_v36 = vadd.f32 %v2708_v47, %v2707_v46  ;;  %v2710_v37 = vpop.f32.mrb[62].mxu1 }
 0x4ba   : > { %v2711_v48 = vpop.f32.mrb[63].mxu1 }
 0x4bb   : > { %v2712_v49 = vadd.f32 %v2711_v48, %v2710_v37  ;;  %v2217_v50 = vadd.f32 %v2709_v36, %v3819_v61 }
 0x4bd   : > { %v2220_v51 = vadd.f32 %v2712_v49, %v3819_v61 }
 0x4bf   : > { %v2647_v38 = vpack.c.bf16 %v2220_v51, %v2217_v50  ;;  %v2713_v42 = vpop.f32.mrb[64].mxu1 }
 0x4c0   : > { %v2714_v52 = vpop.f32.mrb[65].mxu1 }
 0x4c1   : > { %2659 = vst [vmem:[%s3824_s22 + $0x28] sm:$0xff] %v2647_v38   ;;  %v2715_v43 = vadd.f32 %v2714_v52, %v2713_v42  ;;  %v2716_v53 = vpop.f32.mrb[66].mxu1 }
 0x4c2   : > { %v2717_v39 = vpop.f32.mrb[67].mxu1 }
 0x4c3   : > { %v2718_v54 = vadd.f32 %v2717_v39, %v2716_v53  ;;  %v2225_v56 = vadd.f32 %v2715_v43, %v3819_v61 }
 0x4c5   : > { %v2228_v62 = vadd.f32 %v2718_v54, %v3819_v61 }
 0x4c7   : > { %v2652_v63 = vpack.c.bf16 %v2228_v62, %v2225_v56 }
 0x4c9   : > { %2660 = vst [vmem:[%s3824_s22 + $0x30] sm:$0xff] %v2652_v63  }
 0x4ca   : > { %3252 = shalt.err (!%p3249_p13)
}
 0x4cb   : > { %s3253_s18 = scalar_lea.hbm %s3851_s17, 896  ;;  %s3257_s22 = scalar_lea.hbm %s3929_s15, 1792 }
 0x4cc   : > { %p3254_p9 = scmp.ne.s32.totalorder %s3851_s17, %s3253_s18  ;;  %p3258_p4 = scmp.lt.u32.totalorder %s3851_s17, %s3929_s15 }
 0x4cd   : > { %p3259_p8 = scmp.lt.u32.totalorder %s3257_s22, %s3253_s18  ;;  %p3261_p10 = scmp.lt.u32.totalorder %s3253_s18, %s3851_s17 }
 0x4ce   : > { %p3255_p0 = pnand %p3254_p9, %p3550_p3 }
 0x4cf   : > { %p3260_p6 = por %p3259_p8, %p3258_p4 }
 0x4d0   : > { %p3256_p11 = pneg %p3255_p0 }
 0x4d1   : > { %p3262_p5 = por %p3261_p10, %p3260_p6 }
 0x4d3   : > { %p3263_p7 = pnand %p3262_p5, %p3256_p11 }
 0x4d5   : > { %3266 = shalt.err (!%p3263_p7)
}
 0x4d6   : > { %s3327_s20 = smov 64   ;;  %s3328_s24 = smov 4  }
 0x4d7   : > { %2812 = dma.vmem_to_hbm [thread:$0]  (%p3550_p3), %s3844_s27, 896, %s3851_s17, %s2302_s21, %s3327_s20, %s3327_s20, %s3328_s24  }
 0x4d8 PF: > { %s3930_s13 = sld [smem:[#allocation16_spill]]  ;;  %s3931_s14 = sld [smem:[#allocation17_spill]] }
 0x4d9   : > { %p3933_p1 = scmp.ge.s32.totalorder %s3313_s12, 2 }
 0x4de   : > { %s2330_s26 = sand.u32 1, %s3930_s13   ;;  %p3932_p12 = scmp.ne.s32.totalorder %s3931_s14, 0 }
 0x4df   : > { %s2331_s18 = scalar_lea.sflag [#allocation4], %s2330_s26 }
 0x4e0   : > { %p2832_p2 = pnand %p3933_p1, %p3932_p12 }
 0x4e2   : > { %3296 = dma.done.wait (!%p2832_p2), %s2331_s18, 896  }
 0x4e3   : > { %3298 = vsyncadd (!%p2832_p2), %s2331_s18, 4294966400  ;;  %p24_p13 = scmp.ge.s32.totalorder %s3537_s9, 4   ;;  %s3934_s30 = smov %s3305_s10 }
 0x4e4   : > { %s3935_s10 = smov %s3309_s11  ;;  %s3936_s11 = smov %s3546_s28 }
 0x4e5   : > { %s3937_s12 = smov %s3537_s9  ;;  %26 = sbr.rel (!%p24_p13) target bundleno = 9 (0x9), region = 117 }
 0x4ec   :  { %2336 = vsyncpa [#allocation3], 1 }
 0x4ed   :  { %2338 = vsyncpa [#allocation3 + $0x1], 1 }
 0x4ee   :  { %2339 = vsyncpa [#allocation6], 1 }
 0x4ef   :  { %2340 = vsyncpa [#allocation9], 1 }
 0x4f0   :  { %2341 = vsyncpa [#allocation4], 1 }
 0x4f1   :  { %2343 = vsyncpa [#allocation4 + $0x1], 1 }

</bundles_post_ra>
